<compile_context>
chip_gen: v7x
topology: tpu7x:2x2x1
jax: 0.10.0
libtpu: 0.0.40
codegen_flags: <defaults>
</compile_context>

<pallas_src>
import jax
import jax.numpy as jnp
from jax import lax
from jax.experimental import pallas as pl
from jax.experimental.pallas import tpu as pltpu
import numpy as np


def bottleneck_kernel(x_ref, w1_ref, b1_ref, w2_ref, b2_ref, w3_ref, b3_ref,
                      o_ref, pad_ref):
    N, H, W, Cin = x_ref.shape
    C = w1_ref.shape[1]
    Cout = w3_ref.shape[1]
    M = N * H * W

    x2d = x_ref[...].reshape(M, Cin)                       # (N*H*W, Cin) f32

    # --- conv1 (1x1, BN scale folded into w1) + bias + relu : bf16 MXU matmul
    y1 = jnp.dot(x2d.astype(jnp.bfloat16), w1_ref[...],
                 preferred_element_type=jnp.float32)
    y1 = jnp.maximum(y1 + b1_ref[...], 0.0)                # (M, C) f32

    # --- conv2 (3x3, stride=1, pad=1) as ONE im2col matmul (K = 9*C) ---
    # Zero-pad y1 per image into the VMEM scratch (single invocation, so this
    # zero-fill happens exactly once), then gather the 9 taps into a
    # (M, 9*C) patch matrix and do a single bf16 matmul.
    pad_ref[...] = jnp.zeros_like(pad_ref)
    y1_img = y1.reshape(N, H, W, C)
    for n in range(N):                                     # static unroll, N small
        pad_ref[n, 1:H + 1, 1:W + 1, :] = y1_img[n]

    rows = []
    for n in range(N):
        taps = [pad_ref[n, dy:dy + H, dx:dx + W, :].reshape(H * W, C)
                for dy in range(3) for dx in range(3)]
        rows.append(jnp.concatenate(taps, axis=-1))        # (H*W, 9*C)
    patches = jnp.concatenate(rows, axis=0).astype(jnp.bfloat16)   # (M, 9*C)

    y2 = jnp.dot(patches, w2_ref[...], preferred_element_type=jnp.float32)
    y2 = jnp.maximum(y2 + b2_ref[...], 0.0)                # (M, C) f32

    # --- conv3 (1x1) + bias + residual add + relu ---
    y3 = jnp.dot(y2.astype(jnp.bfloat16), w3_ref[...],
                 preferred_element_type=jnp.float32)
    y3 = jnp.maximum(y3 + b3_ref[...] + x2d, 0.0)          # (M, Cout == Cin)

    o_ref[...] = y3.reshape(N, H, W, Cout)


def bottleneck_block(x_nhwc, w1, s1, b1, w2, s2, b2, w3, s3, b3):
    N, H, W, Cin = x_nhwc.shape
    C = w1.shape[1]
    Cout = w3.shape[1]
    # stride=1, identity_downsample=None => residual add requires Cin == Cout.
    assert Cin == Cout, "identity path requires in_channels == 4*intermediate"

    # Fold BN scales into the bias-free conv weights (exact) and cast to bf16.
    w1f = (w1 * s1[None, :]).astype(jnp.bfloat16)                       # (Cin, C)
    w2f = (w2 * s2[None, None, None, :]).reshape(9 * C, C).astype(jnp.bfloat16)
    w3f = (w3 * s3[None, :]).astype(jnp.bfloat16)                       # (C, Cout)
    b1r = b1.reshape(1, C).astype(jnp.float32)
    b2r = b2.reshape(1, C).astype(jnp.float32)
    b3r = b3.reshape(1, Cout).astype(jnp.float32)

    def full(a):
        nd = a.ndim
        return pl.BlockSpec(a.shape, lambda i, _nd=nd: (0,) * _nd)

    return pl.pallas_call(
        bottleneck_kernel,
        out_shape=jax.ShapeDtypeStruct((N, H, W, Cout), jnp.float32),
        grid=(1,),                       # whole batch fused into M = N*H*W
        in_specs=[
            pl.BlockSpec((N, H, W, Cin), lambda i: (0, 0, 0, 0)),
            full(w1f), full(b1r),
            full(w2f), full(b2r),
            full(w3f), full(b3r),
        ],
        out_specs=pl.BlockSpec((N, H, W, Cout), lambda i: (0, 0, 0, 0)),
        scratch_shapes=[pltpu.VMEM((N, H + 2, W + 2, C), jnp.float32)],
        compiler_params=pltpu.CompilerParams(
            dimension_semantics=("arbitrary",)),
    )(x_nhwc, w1f, b1r, w2f, b2r, w3f, b3r)


def ref_forward(x, w1f, b1, w2f, b2, w3f, b3):
    # Pure-JAX reference (NHWC / HWIO) with the same folded bf16 weights and
    # the same bf16 cast points as the kernel; f32 accumulation.
    dn = ('NHWC', 'HWIO', 'NHWC')
    Cin, C = w1f.shape
    Cout = w3f.shape[1]
    y = lax.conv_general_dilated(x.astype(jnp.bfloat16),
                                 w1f.reshape(1, 1, Cin, C), (1, 1), 'VALID',
                                 dimension_numbers=dn,
                                 preferred_element_type=jnp.float32)
    y = jnp.maximum(y + b1.reshape(1, 1, 1, -1), 0.0)
    y = lax.conv_general_dilated(y.astype(jnp.bfloat16), w2f, (1, 1),
                                 ((1, 1), (1, 1)), dimension_numbers=dn,
                                 preferred_element_type=jnp.float32)
    y = jnp.maximum(y + b2.reshape(1, 1, 1, -1), 0.0)
    y = lax.conv_general_dilated(y.astype(jnp.bfloat16),
                                 w3f.reshape(1, 1, C, Cout), (1, 1), 'VALID',
                                 dimension_numbers=dn,
                                 preferred_element_type=jnp.float32)
    y = y + b3.reshape(1, 1, 1, -1) + x
    return jnp.maximum(y, 0.0)


def fold_bn(gamma, beta, mean, var, eps=1e-5):
    scale = gamma / jnp.sqrt(var + eps)
    bias = beta - mean * scale
    return scale, bias


if __name__ == "__main__":
    # block(in_channels=128, intermediate_channels=32, stride=1,
    #       identity_downsample=None)   =>   out channels = 32 * 4 = 128
    N, H, W = 2, 8, 8
    Cin, C = 128, 32
    Cout = 4 * C

    key = jax.random.PRNGKey(0)
    ks = jax.random.split(key, 8)

    x_nchw = jax.random.normal(ks[0], (N, Cin, H, W), jnp.float32)
    x_nhwc = jnp.transpose(x_nchw, (0, 2, 3, 1))

    # conv weights (bias=False in the PyTorch module)
    w1 = 0.10 * jax.random.normal(ks[1], (Cin, C), jnp.float32)        # 1x1
    w2 = 0.10 * jax.random.normal(ks[2], (3, 3, C, C), jnp.float32)    # 3x3 HWIO
    w3 = 0.05 * jax.random.normal(ks[3], (C, Cout), jnp.float32)       # 1x1

    # deterministic inference-mode BatchNorm params, folded to scale/bias
    def bn_params(k, ch):
        k1, k2, k3, k4 = jax.random.split(k, 4)
        gamma = jax.random.uniform(k1, (ch,), jnp.float32, 0.5, 1.5)
        beta = 0.1 * jax.random.normal(k2, (ch,), jnp.float32)
        mean = 0.1 * jax.random.normal(k3, (ch,), jnp.float32)
        var = jax.random.uniform(k4, (ch,), jnp.float32, 0.5, 1.5)
        return fold_bn(gamma, beta, mean, var)

    s1, b1 = bn_params(ks[4], C)
    s2, b2 = bn_params(ks[5], C)
    s3, b3 = bn_params(ks[6], Cout)

    out = bottleneck_block(x_nhwc, w1, s1, b1, w2, s2, b2, w3, s3, b3)
    out = jax.block_until_ready(out)

    # reference with identical folded bf16 weights
    w1f = (w1 * s1[None, :]).astype(jnp.bfloat16)
    w2f = (w2 * s2[None, None, None, :]).astype(jnp.bfloat16)
    w3f = (w3 * s3[None, :]).astype(jnp.bfloat16)
    ref = ref_forward(x_nhwc, w1f, b1, w2f, b2, w3f, b3)

    np.testing.assert_allclose(np.asarray(out), np.asarray(ref),
                               rtol=5e-3, atol=5e-3)
    print("KERNEL_OK")
</pallas_src>

<mosaic_0001>
module attributes {stable_mosaic.version = 11 : i64} {
  func.func @bottleneck_kernel(%arg0: i32, %arg1: memref<2x8x8x128xf32, #tpu.memory_space<vmem>>, %arg2: memref<128x32xbf16, #tpu.memory_space<vmem>>, %arg3: memref<1x32xf32, #tpu.memory_space<vmem>>, %arg4: memref<288x32xbf16, #tpu.memory_space<vmem>>, %arg5: memref<1x32xf32, #tpu.memory_space<vmem>>, %arg6: memref<32x128xbf16, #tpu.memory_space<vmem>>, %arg7: memref<1x128xf32, #tpu.memory_space<vmem>>, %arg8: memref<2x8x8x128xf32, #tpu.memory_space<vmem>>, %arg9: memref<2x10x10x32xf32, #tpu.memory_space<vmem>>) attributes {dimension_semantics = [#tpu.dimension_semantics<arbitrary>], iteration_bounds = array<i64: 1>, scalar_prefetch = 0 : i64, scratch_operands = 1 : i64, tpu.core_type = #tpu.core_type<tc>, window_params = [{pipeline_mode = #tpu.pipeline_mode<synchronous>, transform_indices = @transform_0, window_bounds = array<i64: 2, 8, 8, 128>}, {pipeline_mode = #tpu.pipeline_mode<synchronous>, transform_indices = @transform_1, window_bounds = array<i64: 128, 32>}, {pipeline_mode = #tpu.pipeline_mode<synchronous>, transform_indices = @transform_2, window_bounds = array<i64: 1, 32>}, {pipeline_mode = #tpu.pipeline_mode<synchronous>, transform_indices = @transform_3, window_bounds = array<i64: 288, 32>}, {pipeline_mode = #tpu.pipeline_mode<synchronous>, transform_indices = @transform_4, window_bounds = array<i64: 1, 32>}, {pipeline_mode = #tpu.pipeline_mode<synchronous>, transform_indices = @transform_5, window_bounds = array<i64: 32, 128>}, {pipeline_mode = #tpu.pipeline_mode<synchronous>, transform_indices = @transform_6, window_bounds = array<i64: 1, 128>}, {pipeline_mode = #tpu.pipeline_mode<synchronous>, transform_indices = @transform_7, window_bounds = array<i64: 2, 8, 8, 128>}]} {
    %c0 = arith.constant 0 : index
    %c0_0 = arith.constant 0 : index
    %c0_1 = arith.constant 0 : index
    %c0_2 = arith.constant 0 : index
    %0 = vector.load %arg1[%c0, %c0_0, %c0_1, %c0_2] : memref<2x8x8x128xf32, #tpu.memory_space<vmem>>, vector<2x8x8x128xf32>
    %1 = vector.shape_cast %0 : vector<2x8x8x128xf32> to vector<128x128xf32>
    %2 = arith.truncf %1 : vector<128x128xf32> to vector<128x128xbf16>
    %c0_3 = arith.constant 0 : index
    %c0_4 = arith.constant 0 : index
    %3 = vector.load %arg2[%c0_3, %c0_4] : memref<128x32xbf16, #tpu.memory_space<vmem>>, vector<128x32xbf16>
    %cst = arith.constant dense<0.000000e+00> : vector<128x32xf32>
    %4 = tpu.matmul %2, %3, %cst {dimension_numbers = #tpu.dot_dimension_numbers<[1], [0], [0], [1], [0, 0, 1, 1], [], []>} : vector<128x128xbf16>, vector<128x32xbf16>, vector<128x32xf32> -> vector<128x32xf32>
    %c0_5 = arith.constant 0 : index
    %c0_6 = arith.constant 0 : index
    %5 = vector.load %arg3[%c0_5, %c0_6] : memref<1x32xf32, #tpu.memory_space<vmem>>, vector<1x32xf32>
    %6 = vector.broadcast %5 : vector<1x32xf32> to vector<128x32xf32>
    %7 = arith.addf %4, %6 : vector<128x32xf32>
    %cst_7 = arith.constant 0.000000e+00 : f32
    %8 = vector.broadcast %cst_7 : f32 to vector<128x32xf32>
    %9 = arith.maximumf %7, %8 : vector<128x32xf32>
    %cst_8 = arith.constant 0.000000e+00 : f32
    %10 = vector.broadcast %cst_8 : f32 to vector<2x10x10x32xf32>
    %c0_9 = arith.constant 0 : index
    %c0_10 = arith.constant 0 : index
    %c0_11 = arith.constant 0 : index
    %c0_12 = arith.constant 0 : index
    %11 = vector.load %arg9[%c0_9, %c0_10, %c0_11, %c0_12] : memref<2x10x10x32xf32, #tpu.memory_space<vmem>>, vector<2x10x10x32xf32>
    tpu.vector_store %arg9[%c0_9, %c0_10, %c0_11, %c0_12], %10 {strides = array<i32>} : memref<2x10x10x32xf32, #tpu.memory_space<vmem>>, vector<2x10x10x32xf32>,
    %12 = vector.shape_cast %9 : vector<128x32xf32> to vector<2x8x8x32xf32>
    %13 = vector.extract_strided_slice %12 {offsets = [0, 0, 0, 0], sizes = [1, 8, 8, 32], strides = [1, 1, 1, 1]} : vector<2x8x8x32xf32> to vector<1x8x8x32xf32>
    %14 = vector.shape_cast %13 : vector<1x8x8x32xf32> to vector<8x8x32xf32>
    %c0_13 = arith.constant 0 : index
    %c1 = arith.constant 1 : index
    %c1_14 = arith.constant 1 : index
    %c0_15 = arith.constant 0 : index
    %15 = vector.load %arg9[%c0_13, %c1, %c1_14, %c0_15] : memref<2x10x10x32xf32, #tpu.memory_space<vmem>>, vector<1x8x8x32xf32>
    %16 = vector.shape_cast %15 : vector<1x8x8x32xf32> to vector<8x8x32xf32>
    %17 = vector.shape_cast %14 : vector<8x8x32xf32> to vector<1x8x8x32xf32>
    tpu.vector_store %arg9[%c0_13, %c1, %c1_14, %c0_15], %17 {strides = array<i32>} : memref<2x10x10x32xf32, #tpu.memory_space<vmem>>, vector<1x8x8x32xf32>,
    %18 = vector.extract_strided_slice %12 {offsets = [1, 0, 0, 0], sizes = [1, 8, 8, 32], strides = [1, 1, 1, 1]} : vector<2x8x8x32xf32> to vector<1x8x8x32xf32>
    %19 = vector.shape_cast %18 : vector<1x8x8x32xf32> to vector<8x8x32xf32>
    %c1_16 = arith.constant 1 : index
    %c1_17 = arith.constant 1 : index
    %c1_18 = arith.constant 1 : index
    %c0_19 = arith.constant 0 : index
    %20 = vector.load %arg9[%c1_16, %c1_17, %c1_18, %c0_19] : memref<2x10x10x32xf32, #tpu.memory_space<vmem>>, vector<1x8x8x32xf32>
    %21 = vector.shape_cast %20 : vector<1x8x8x32xf32> to vector<8x8x32xf32>
    %22 = vector.shape_cast %19 : vector<8x8x32xf32> to vector<1x8x8x32xf32>
    tpu.vector_store %arg9[%c1_16, %c1_17, %c1_18, %c0_19], %22 {strides = array<i32>} : memref<2x10x10x32xf32, #tpu.memory_space<vmem>>, vector<1x8x8x32xf32>,
    %c0_20 = arith.constant 0 : index
    %c0_21 = arith.constant 0 : index
    %c0_22 = arith.constant 0 : index
    %c0_23 = arith.constant 0 : index
    %23 = vector.load %arg9[%c0_20, %c0_21, %c0_22, %c0_23] : memref<2x10x10x32xf32, #tpu.memory_space<vmem>>, vector<1x8x8x32xf32>
    %24 = vector.shape_cast %23 : vector<1x8x8x32xf32> to vector<8x8x32xf32>
    %25 = vector.shape_cast %24 : vector<8x8x32xf32> to vector<64x32xf32>
    %c0_24 = arith.constant 0 : index
    %c0_25 = arith.constant 0 : index
    %c1_26 = arith.constant 1 : index
    %c0_27 = arith.constant 0 : index
    %26 = vector.load %arg9[%c0_24, %c0_25, %c1_26, %c0_27] : memref<2x10x10x32xf32, #tpu.memory_space<vmem>>, vector<1x8x8x32xf32>
    %27 = vector.shape_cast %26 : vector<1x8x8x32xf32> to vector<8x8x32xf32>
    %28 = vector.shape_cast %27 : vector<8x8x32xf32> to vector<64x32xf32>
    %c0_28 = arith.constant 0 : index
    %c0_29 = arith.constant 0 : index
    %c2 = arith.constant 2 : index
    %c0_30 = arith.constant 0 : index
    %29 = vector.load %arg9[%c0_28, %c0_29, %c2, %c0_30] : memref<2x10x10x32xf32, #tpu.memory_space<vmem>>, vector<1x8x8x32xf32>
    %30 = vector.shape_cast %29 : vector<1x8x8x32xf32> to vector<8x8x32xf32>
    %31 = vector.shape_cast %30 : vector<8x8x32xf32> to vector<64x32xf32>
    %c0_31 = arith.constant 0 : index
    %c1_32 = arith.constant 1 : index
    %c0_33 = arith.constant 0 : index
    %c0_34 = arith.constant 0 : index
    %32 = vector.load %arg9[%c0_31, %c1_32, %c0_33, %c0_34] : memref<2x10x10x32xf32, #tpu.memory_space<vmem>>, vector<1x8x8x32xf32>
    %33 = vector.shape_cast %32 : vector<1x8x8x32xf32> to vector<8x8x32xf32>
    %34 = vector.shape_cast %33 : vector<8x8x32xf32> to vector<64x32xf32>
    %c0_35 = arith.constant 0 : index
    %c1_36 = arith.constant 1 : index
    %c1_37 = arith.constant 1 : index
    %c0_38 = arith.constant 0 : index
    %35 = vector.load %arg9[%c0_35, %c1_36, %c1_37, %c0_38] : memref<2x10x10x32xf32, #tpu.memory_space<vmem>>, vector<1x8x8x32xf32>
    %36 = vector.shape_cast %35 : vector<1x8x8x32xf32> to vector<8x8x32xf32>
    %37 = vector.shape_cast %36 : vector<8x8x32xf32> to vector<64x32xf32>
    %c0_39 = arith.constant 0 : index
    %c1_40 = arith.constant 1 : index
    %c2_41 = arith.constant 2 : index
    %c0_42 = arith.constant 0 : index
    %38 = vector.load %arg9[%c0_39, %c1_40, %c2_41, %c0_42] : memref<2x10x10x32xf32, #tpu.memory_space<vmem>>, vector<1x8x8x32xf32>
    %39 = vector.shape_cast %38 : vector<1x8x8x32xf32> to vector<8x8x32xf32>
    %40 = vector.shape_cast %39 : vector<8x8x32xf32> to vector<64x32xf32>
    %c0_43 = arith.constant 0 : index
    %c2_44 = arith.constant 2 : index
    %c0_45 = arith.constant 0 : index
    %c0_46 = arith.constant 0 : index
    %41 = vector.load %arg9[%c0_43, %c2_44, %c0_45, %c0_46] : memref<2x10x10x32xf32, #tpu.memory_space<vmem>>, vector<1x8x8x32xf32>
    %42 = vector.shape_cast %41 : vector<1x8x8x32xf32> to vector<8x8x32xf32>
    %43 = vector.shape_cast %42 : vector<8x8x32xf32> to vector<64x32xf32>
    %c0_47 = arith.constant 0 : index
    %c2_48 = arith.constant 2 : index
    %c1_49 = arith.constant 1 : index
    %c0_50 = arith.constant 0 : index
    %44 = vector.load %arg9[%c0_47, %c2_48, %c1_49, %c0_50] : memref<2x10x10x32xf32, #tpu.memory_space<vmem>>, vector<1x8x8x32xf32>
    %45 = vector.shape_cast %44 : vector<1x8x8x32xf32> to vector<8x8x32xf32>
    %46 = vector.shape_cast %45 : vector<8x8x32xf32> to vector<64x32xf32>
    %c0_51 = arith.constant 0 : index
    %c2_52 = arith.constant 2 : index
    %c2_53 = arith.constant 2 : index
    %c0_54 = arith.constant 0 : index
    %47 = vector.load %arg9[%c0_51, %c2_52, %c2_53, %c0_54] : memref<2x10x10x32xf32, #tpu.memory_space<vmem>>, vector<1x8x8x32xf32>
    %48 = vector.shape_cast %47 : vector<1x8x8x32xf32> to vector<8x8x32xf32>
    %49 = vector.shape_cast %48 : vector<8x8x32xf32> to vector<64x32xf32>
    %50 = tpu.concatenate %25, %28, %31, %34, %37, %40, %43, %46, %49 in 1 : vector<64x32xf32>, vector<64x32xf32>, vector<64x32xf32>, vector<64x32xf32>, vector<64x32xf32>, vector<64x32xf32>, vector<64x32xf32>, vector<64x32xf32>, vector<64x32xf32> -> vector<64x288xf32>
    %c1_55 = arith.constant 1 : index
    %c0_56 = arith.constant 0 : index
    %c0_57 = arith.constant 0 : index
    %c0_58 = arith.constant 0 : index
    %51 = vector.load %arg9[%c1_55, %c0_56, %c0_57, %c0_58] : memref<2x10x10x32xf32, #tpu.memory_space<vmem>>, vector<1x8x8x32xf32>
    %52 = vector.shape_cast %51 : vector<1x8x8x32xf32> to vector<8x8x32xf32>
    %53 = vector.shape_cast %52 : vector<8x8x32xf32> to vector<64x32xf32>
    %c1_59 = arith.constant 1 : index
    %c0_60 = arith.constant 0 : index
    %c1_61 = arith.constant 1 : index
    %c0_62 = arith.constant 0 : index
    %54 = vector.load %arg9[%c1_59, %c0_60, %c1_61, %c0_62] : memref<2x10x10x32xf32, #tpu.memory_space<vmem>>, vector<1x8x8x32xf32>
    %55 = vector.shape_cast %54 : vector<1x8x8x32xf32> to vector<8x8x32xf32>
    %56 = vector.shape_cast %55 : vector<8x8x32xf32> to vector<64x32xf32>
    %c1_63 = arith.constant 1 : index
    %c0_64 = arith.constant 0 : index
    %c2_65 = arith.constant 2 : index
    %c0_66 = arith.constant 0 : index
    %57 = vector.load %arg9[%c1_63, %c0_64, %c2_65, %c0_66] : memref<2x10x10x32xf32, #tpu.memory_space<vmem>>, vector<1x8x8x32xf32>
    %58 = vector.shape_cast %57 : vector<1x8x8x32xf32> to vector<8x8x32xf32>
    %59 = vector.shape_cast %58 : vector<8x8x32xf32> to vector<64x32xf32>
    %c1_67 = arith.constant 1 : index
    %c1_68 = arith.constant 1 : index
    %c0_69 = arith.constant 0 : index
    %c0_70 = arith.constant 0 : index
    %60 = vector.load %arg9[%c1_67, %c1_68, %c0_69, %c0_70] : memref<2x10x10x32xf32, #tpu.memory_space<vmem>>, vector<1x8x8x32xf32>
    %61 = vector.shape_cast %60 : vector<1x8x8x32xf32> to vector<8x8x32xf32>
    %62 = vector.shape_cast %61 : vector<8x8x32xf32> to vector<64x32xf32>
    %c1_71 = arith.constant 1 : index
    %c1_72 = arith.constant 1 : index
    %c1_73 = arith.constant 1 : index
    %c0_74 = arith.constant 0 : index
    %63 = vector.load %arg9[%c1_71, %c1_72, %c1_73, %c0_74] : memref<2x10x10x32xf32, #tpu.memory_space<vmem>>, vector<1x8x8x32xf32>
    %64 = vector.shape_cast %63 : vector<1x8x8x32xf32> to vector<8x8x32xf32>
    %65 = vector.shape_cast %64 : vector<8x8x32xf32> to vector<64x32xf32>
    %c1_75 = arith.constant 1 : index
    %c1_76 = arith.constant 1 : index
    %c2_77 = arith.constant 2 : index
    %c0_78 = arith.constant 0 : index
    %66 = vector.load %arg9[%c1_75, %c1_76, %c2_77, %c0_78] : memref<2x10x10x32xf32, #tpu.memory_space<vmem>>, vector<1x8x8x32xf32>
    %67 = vector.shape_cast %66 : vector<1x8x8x32xf32> to vector<8x8x32xf32>
    %68 = vector.shape_cast %67 : vector<8x8x32xf32> to vector<64x32xf32>
    %c1_79 = arith.constant 1 : index
    %c2_80 = arith.constant 2 : index
    %c0_81 = arith.constant 0 : index
    %c0_82 = arith.constant 0 : index
    %69 = vector.load %arg9[%c1_79, %c2_80, %c0_81, %c0_82] : memref<2x10x10x32xf32, #tpu.memory_space<vmem>>, vector<1x8x8x32xf32>
    %70 = vector.shape_cast %69 : vector<1x8x8x32xf32> to vector<8x8x32xf32>
    %71 = vector.shape_cast %70 : vector<8x8x32xf32> to vector<64x32xf32>
    %c1_83 = arith.constant 1 : index
    %c2_84 = arith.constant 2 : index
    %c1_85 = arith.constant 1 : index
    %c0_86 = arith.constant 0 : index
    %72 = vector.load %arg9[%c1_83, %c2_84, %c1_85, %c0_86] : memref<2x10x10x32xf32, #tpu.memory_space<vmem>>, vector<1x8x8x32xf32>
    %73 = vector.shape_cast %72 : vector<1x8x8x32xf32> to vector<8x8x32xf32>
    %74 = vector.shape_cast %73 : vector<8x8x32xf32> to vector<64x32xf32>
    %c1_87 = arith.constant 1 : index
    %c2_88 = arith.constant 2 : index
    %c2_89 = arith.constant 2 : index
    %c0_90 = arith.constant 0 : index
    %75 = vector.load %arg9[%c1_87, %c2_88, %c2_89, %c0_90] : memref<2x10x10x32xf32, #tpu.memory_space<vmem>>, vector<1x8x8x32xf32>
    %76 = vector.shape_cast %75 : vector<1x8x8x32xf32> to vector<8x8x32xf32>
    %77 = vector.shape_cast %76 : vector<8x8x32xf32> to vector<64x32xf32>
    %78 = tpu.concatenate %53, %56, %59, %62, %65, %68, %71, %74, %77 in 1 : vector<64x32xf32>, vector<64x32xf32>, vector<64x32xf32>, vector<64x32xf32>, vector<64x32xf32>, vector<64x32xf32>, vector<64x32xf32>, vector<64x32xf32>, vector<64x32xf32> -> vector<64x288xf32>
    %79 = tpu.concatenate %50, %78 in 0 : vector<64x288xf32>, vector<64x288xf32> -> vector<128x288xf32>
    %80 = arith.truncf %79 : vector<128x288xf32> to vector<128x288xbf16>
    %c0_91 = arith.constant 0 : index
    %c0_92 = arith.constant 0 : index
    %81 = vector.load %arg4[%c0_91, %c0_92] : memref<288x32xbf16, #tpu.memory_space<vmem>>, vector<288x32xbf16>
    %cst_93 = arith.constant dense<0.000000e+00> : vector<128x32xf32>
    %82 = tpu.matmul %80, %81, %cst_93 {dimension_numbers = #tpu.dot_dimension_numbers<[1], [0], [0], [1], [0, 0, 1, 1], [], []>} : vector<128x288xbf16>, vector<288x32xbf16>, vector<128x32xf32> -> vector<128x32xf32>
    %c0_94 = arith.constant 0 : index
    %c0_95 = arith.constant 0 : index
    %83 = vector.load %arg5[%c0_94, %c0_95] : memref<1x32xf32, #tpu.memory_space<vmem>>, vector<1x32xf32>
    %84 = vector.broadcast %83 : vector<1x32xf32> to vector<128x32xf32>
    %85 = arith.addf %82, %84 : vector<128x32xf32>
    %cst_96 = arith.constant 0.000000e+00 : f32
    %86 = vector.broadcast %cst_96 : f32 to vector<128x32xf32>
    %87 = arith.maximumf %85, %86 : vector<128x32xf32>
    %88 = arith.truncf %87 : vector<128x32xf32> to vector<128x32xbf16>
    %c0_97 = arith.constant 0 : index
    %c0_98 = arith.constant 0 : index
    %89 = vector.load %arg6[%c0_97, %c0_98] : memref<32x128xbf16, #tpu.memory_space<vmem>>, vector<32x128xbf16>
    %cst_99 = arith.constant dense<0.000000e+00> : vector<128x128xf32>
    %90 = tpu.matmul %88, %89, %cst_99 {dimension_numbers = #tpu.dot_dimension_numbers<[1], [0], [0], [1], [0, 0, 1, 1], [], []>} : vector<128x32xbf16>, vector<32x128xbf16>, vector<128x128xf32> -> vector<128x128xf32>
    %c0_100 = arith.constant 0 : index
    %c0_101 = arith.constant 0 : index
    %91 = vector.load %arg7[%c0_100, %c0_101] : memref<1x128xf32, #tpu.memory_space<vmem>>, vector<1x128xf32>
    %92 = vector.broadcast %91 : vector<1x128xf32> to vector<128x128xf32>
    %93 = arith.addf %90, %92 : vector<128x128xf32>
    %94 = arith.addf %93, %1 : vector<128x128xf32>
    %cst_102 = arith.constant 0.000000e+00 : f32
    %95 = vector.broadcast %cst_102 : f32 to vector<128x128xf32>
    %96 = arith.maximumf %94, %95 : vector<128x128xf32>
    %97 = vector.shape_cast %96 : vector<128x128xf32> to vector<2x8x8x128xf32>
    %c0_103 = arith.constant 0 : index
    %c0_104 = arith.constant 0 : index
    %c0_105 = arith.constant 0 : index
    %c0_106 = arith.constant 0 : index
    %98 = vector.load %arg8[%c0_103, %c0_104, %c0_105, %c0_106] : memref<2x8x8x128xf32, #tpu.memory_space<vmem>>, vector<2x8x8x128xf32>
    tpu.vector_store %arg8[%c0_103, %c0_104, %c0_105, %c0_106], %97 {strides = array<i32>} : memref<2x8x8x128xf32, #tpu.memory_space<vmem>>, vector<2x8x8x128xf32>,
    return
  }
  func.func @transform_0(%arg0: i32) -> (i32, i32, i32, i32) {
    %c0_i32 = arith.constant 0 : i32
    %c0_i32_0 = arith.constant 0 : i32
    %c0_i32_1 = arith.constant 0 : i32
    %c0_i32_2 = arith.constant 0 : i32
    %c0_i32_3 = arith.constant 0 : i32
    return %c0_i32, %c0_i32_0, %c0_i32_1, %c0_i32_2 : i32, i32, i32, i32
  }
  func.func @transform_1(%arg0: i32) -> (i32, i32) {
    %c0_i32 = arith.constant 0 : i32
    %c0_i32_0 = arith.constant 0 : i32
    %c0_i32_1 = arith.constant 0 : i32
    return %c0_i32, %c0_i32_0 : i32, i32
  }
  func.func @transform_2(%arg0: i32) -> (i32, i32) {
    %c0_i32 = arith.constant 0 : i32
    %c0_i32_0 = arith.constant 0 : i32
    %c0_i32_1 = arith.constant 0 : i32
    return %c0_i32, %c0_i32_0 : i32, i32
  }
  func.func @transform_3(%arg0: i32) -> (i32, i32) {
    %c0_i32 = arith.constant 0 : i32
    %c0_i32_0 = arith.constant 0 : i32
    %c0_i32_1 = arith.constant 0 : i32
    return %c0_i32, %c0_i32_0 : i32, i32
  }
  func.func @transform_4(%arg0: i32) -> (i32, i32) {
    %c0_i32 = arith.constant 0 : i32
    %c0_i32_0 = arith.constant 0 : i32
    %c0_i32_1 = arith.constant 0 : i32
    return %c0_i32, %c0_i32_0 : i32, i32
  }
  func.func @transform_5(%arg0: i32) -> (i32, i32) {
    %c0_i32 = arith.constant 0 : i32
    %c0_i32_0 = arith.constant 0 : i32
    %c0_i32_1 = arith.constant 0 : i32
    return %c0_i32, %c0_i32_0 : i32, i32
  }
  func.func @transform_6(%arg0: i32) -> (i32, i32) {
    %c0_i32 = arith.constant 0 : i32
    %c0_i32_0 = arith.constant 0 : i32
    %c0_i32_1 = arith.constant 0 : i32
    return %c0_i32, %c0_i32_0 : i32, i32
  }
  func.func @transform_7(%arg0: i32) -> (i32, i32, i32, i32) {
    %c0_i32 = arith.constant 0 : i32
    %c0_i32_0 = arith.constant 0 : i32
    %c0_i32_1 = arith.constant 0 : i32
    %c0_i32_2 = arith.constant 0 : i32
    %c0_i32_3 = arith.constant 0 : i32
    return %c0_i32, %c0_i32_0, %c0_i32_1, %c0_i32_2 : i32, i32, i32, i32
  }
}

</mosaic_0001>

<bundles_post_ra>
// kernel: tpu_custom_call.1
= control target key start
LH: loop header
LB: loop body
LE: loop exit
PB: predicated region body
PF: predicated region fallthrough
CT: control target
= control target key end

     0   :  { %s2835_s0 = inlined_call_operand.vmem [shape: f32[2,8,8,128], index: 0, kind: input, shape index: {}]   ;;  %s2836_s1 = inlined_call_operand.vmem [shape: bf16[128,32], index: 1, kind: input, shape index: {}]   ;;  %s2837_s2 = inlined_call_operand.vmem [shape: f32[1,32], index: 2, kind: input, shape index: {}]   ;;  %s2838_s3 = inlined_call_operand.vmem [shape: bf16[288,32], index: 3, kind: input, shape index: {}]   ;;  %s2839_s4 = inlined_call_operand.vmem [shape: f32[1,32], index: 4, kind: input, shape index: {}]   ;;  %s2840_s5 = inlined_call_operand.vmem [shape: bf16[32,128], index: 5, kind: input, shape index: {}]   ;;  %s2841_s6 = inlined_call_operand.vmem [shape: f32[1,128], index: 6, kind: input, shape index: {}]   ;;  %s2842_s7 = inlined_call_operand.hbm [shape: f32[2,8,8,128], index: 7, kind: output, shape index: {}]  }
   0x1   :  { %v2020_v0 = vld [vmem:[%s2836_s1] sm:$0xff]   ;;  %v2021_v1 = vld [vmem:[%s2836_s1 + $0x8] sm:$0xff]   ;;  %v2022_v2 = vld [vmem:[%s2836_s1 + $0x10] sm:$0xff]  }
   0x2   :  { %1697 = vmatprep.subr.bf16.mxu0 %v2020_v0  ;;  %v2023_v3 = vld [vmem:[%s2836_s1 + $0x18] sm:$0xff]   ;;  %v28_v4 = vld [vmem:[%s2835_s0] sm:$0xff]  ;;  %v29_v5 = vld [vmem:[%s2835_s0 + $0x8] sm:$0xff] }
   0x3   :  { %1698 = vmatpush3.bf16.msra.mxu0 %v2020_v0  ;;  %v44_v6 = vpack.c.bf16 %v29_v5, %v28_v4  ;;  %v2024_v7 = vld [vmem:[%s2836_s1 + $0x20] sm:$0xff]   ;;  %v2025_v8 = vld [vmem:[%s2836_s1 + $0x28] sm:$0xff]   ;;  %v2026_v9 = vld [vmem:[%s2836_s1 + $0x30] sm:$0xff]  }
   0x4   :  { %1699 = vmatprep.subr.bf16.mxu0 %v2021_v1  ;;  %v2027_v10 = vld [vmem:[%s2836_s1 + $0x38] sm:$0xff]  }
   0x5   :  { %1713 = vmatprep.mubr.bf16.mxu0 %v44_v6 }
   0x7   :  { %1700 = vmatpush3.bf16.msra.mxu0 %v2021_v1 }
   0x8   :  { %1701 = vmatprep.subr.bf16.mxu0 %v2022_v2 }
   0xb   :  { %1702 = vmatpush3.bf16.msra.mxu0 %v2022_v2 }
   0xc   :  { %1703 = vmatprep.subr.bf16.mxu0 %v2023_v3 }
   0xf   :  { %1704 = vmatpush3.bf16.msra.mxu0 %v2023_v3 }
  0x10   :  { %1705 = vmatprep.subr.bf16.mxu0 %v2024_v7 }
  0x13   :  { %1706 = vmatpush3.bf16.msra.mxu0 %v2024_v7 }
  0x14   :  { %1707 = vmatprep.subr.bf16.mxu0 %v2025_v8 }
  0x17   :  { %1708 = vmatpush3.bf16.msra.mxu0 %v2025_v8 }
  0x18   :  { %1709 = vmatprep.subr.bf16.mxu0 %v2026_v9 }
  0x19   :  { %12 = vsyncpa [#allocation4], 0  ;;  %v30_v11 = vld [vmem:[%s2835_s0 + $0x10] sm:$0xff]  ;;  %v31_v12 = vld [vmem:[%s2835_s0 + $0x18] sm:$0xff]  ;;  %vm236_vm0 = vcmask 261120   ;;  %vm238_vm1 = vcmask 254976  }
  0x1a   :  { %v32_v13 = vld [vmem:[%s2835_s0 + $0x20] sm:$0xff]  ;;  %v33_v14 = vld [vmem:[%s2835_s0 + $0x28] sm:$0xff]  ;;  %v45_v15 = vpack.c.bf16 %v31_v12, %v30_v11  ;;  %v34_v17 = vld [vmem:[%s2835_s0 + $0x30] sm:$0xff]  ;;  %v2088_v32 = vmov 0.0   ;;  %s2089_s29 = smov 64   ;;  %s2090_s30 = smov 32  }
  0x1b   :  { %1710 = vmatpush3.bf16.msra.mxu0 %v2026_v9  ;;  %v46_v16 = vpack.c.bf16 %v33_v14, %v32_v13  ;;  %v35_v18 = vld [vmem:[%s2835_s0 + $0x38] sm:$0xff]  ;;  %v36_v19 = vld [vmem:[%s2835_s0 + $0x40] sm:$0xff]  ;;  %v37_v20 = vld [vmem:[%s2835_s0 + $0x48] sm:$0xff]  ;;  %244 = vst.msk [vmem:[#allocation2 + $0x30] sm:$0xff] %vm236_vm0, %v2088_v32  ;;  %s2091_s16 = smov 96   ;;  %vm569_vm2 = vcmask 523264  }
  0x1c   :  { %1711 = vmatprep.subr.bf16.mxu0 %v2027_v10  ;;  %v47_v21 = vpack.c.bf16 %v35_v18, %v34_v17  ;;  %v48_v22 = vpack.c.bf16 %v37_v20, %v36_v19  ;;  %v38_v23 = vld [vmem:[%s2835_s0 + $0x50] sm:$0xff]  ;;  %v39_v24 = vld [vmem:[%s2835_s0 + $0x58] sm:$0xff]  ;;  %v40_v25 = vld [vmem:[%s2835_s0 + $0x60] sm:$0xff]  ;;  %245 = vst.msk [vmem:[#allocation2 + $0x38] sm:$0x3] %vm238_vm1, %v2088_v32  ;;  %vm578_vm3 = vcmask 785408  }
  0x1d   :  { %v41_v26 = vld [vmem:[%s2835_s0 + $0x68] sm:$0xff]  ;;  %v49_v27 = vpack.c.bf16 %v39_v24, %v38_v23  ;;  %v42_v29 = vld [vmem:[%s2835_s0 + $0x70] sm:$0xff]  ;;  %v43_v30 = vld [vmem:[%s2835_s0 + $0x78] sm:$0xff]  ;;  %237 = vst.msk [vmem:[#allocation2] sm:$0xff] %vm236_vm0, %v2088_v32 }
  0x1e   :  { %v50_v28 = vpack.c.bf16 %v41_v26, %v40_v25  ;;  %v51_v31 = vpack.c.bf16 %v43_v30, %v42_v29  ;;  %239 = vst.msk [vmem:[#allocation2 + $0x8] sm:$0x3] %vm238_vm1, %v2088_v32  ;;  %241 = vst.msk [vmem:[#allocation2 + $0x18] sm:$0x3] %vm238_vm1, %v2088_v32  ;;  %v2250_v33 = vld [vmem:[%s2838_s3 + $0x80] sm:$0xff]   ;;  %v2257_v34 = vld [vmem:[%s2838_s3 + $0x88] sm:$0xff]  }
  0x1f   :  { %1712 = vmatpush3.bf16.msra.mxu0 %v2027_v10  ;;  %240 = vst.msk [vmem:[#allocation2 + $0x10] sm:$0xff] %vm236_vm0, %v2088_v32  ;;  %242 = vst.msk [vmem:[#allocation2 + $0x20] sm:$0xff] %vm236_vm0, %v2088_v32  ;;  %v2030_v35 = vld [vmem:[%s2838_s3 + $0x40] sm:$0xff]   ;;  %v2032_v37 = vld [vmem:[%s2838_s3 + $0x48] sm:$0xff]  }
  0x20   :  { %243 = vst.msk [vmem:[#allocation2 + $0x28] sm:$0x3] %vm238_vm1, %v2088_v32  ;;  %247 = vst.msk [vmem:[#allocation2 + $0x48] sm:$0x3] %vm238_vm1, %v2088_v32  ;;  %1729 = vmatprep.subr.bf16.mxu0 %v2250_v33  ;;  %v2031_v36 = vld [vmem:[%s2838_s3] sm:$0xff]   ;;  %1613 = vmatprep.subr.bf16.mxu1 %v2030_v35  ;;  %v2033_v38 = vld [vmem:[%s2838_s3 + $0x8] sm:$0xff]  }
  0x21   :  { %246 = vst.msk [vmem:[#allocation2 + $0x40] sm:$0xff] %vm236_vm0, %v2088_v32  ;;  %248 = vst.msk [vmem:[#allocation2 + $0x50] sm:$0xff] %vm236_vm0, %v2088_v32  ;;  %1614 = vmatpush3.bf16.msra.mxu1 %v2031_v36  ;;  %v2034_v39 = vld [vmem:[%s2838_s3 + $0x50] sm:$0xff]   ;;  %v2036_v41 = vld [vmem:[%s2838_s3 + $0x58] sm:$0xff]  }
  0x22   :  { %1714 = vmatmul.mubr.bf16.vlgmr.msra.gmra.mrb[0].mxu0 %v45_v15  ;;  %249 = vst.msk [vmem:[#allocation2 + $0x58] sm:$0x3] %vm238_vm1, %v2088_v32  ;;  %251 = vst.msk [vmem:[#allocation2 + $0x68] sm:$0x3] %vm238_vm1, %v2088_v32  ;;  %1615 = vmatprep.subr.bf16.mxu1 %v2032_v37  ;;  %v2035_v40 = vld [vmem:[%s2838_s3 + $0x10] sm:$0xff]   ;;  %v2037_v42 = vld [vmem:[%s2838_s3 + $0x18] sm:$0xff]  }
  0x23   :  { %1717 = vmatprep.mubr.bf16.mxu0 %v46_v16  ;;  %250 = vst.msk [vmem:[#allocation2 + $0x60] sm:$0xff] %vm236_vm0, %v2088_v32  ;;  %252 = vst.msk [vmem:[#allocation2 + $0x70] sm:$0xff] %vm236_vm0, %v2088_v32  ;;  %1730 = vmatpush3.bf16.msra.mxu0 %v2250_v33  ;;  %v2288_v43 = vld [vmem:[%s2837_s2] ss:$0 sm:$0xff]  ;;  %v2040_v59 = vld [vmem:[%s2838_s3 + $0x68] sm:$0xff]  }
  0x24   :  { %253 = vst.msk [vmem:[#allocation2 + $0x78] sm:$0x3] %vm238_vm1, %v2088_v32  ;;  %255 = vst.msk [vmem:[#allocation2 + $0x88] sm:$0x3] %vm238_vm1, %v2088_v32  ;;  %1731 = vmatprep.subr.bf16.mxu0 %v2257_v34  ;;  %v2038_v54 = vld [vmem:[%s2838_s3 + $0x60] sm:$0xff]   ;;  %v2041_v62 = vld [vmem:[%s2838_s3 + $0x28] sm:$0xff]  }
  0x25   :  { %254 = vst.msk [vmem:[#allocation2 + $0x80] sm:$0xff] %vm236_vm0, %v2088_v32  ;;  %256 = vst.msk [vmem:[#allocation2 + $0x90] sm:$0xff] %vm236_vm0, %v2088_v32  ;;  %1616 = vmatpush3.bf16.msra.mxu1 %v2033_v38  ;;  %v2039_v56 = vld [vmem:[%s2838_s3 + $0x20] sm:$0xff]   ;;  %v2042_v20 = vld [vmem:[%s2838_s3 + $0x70] sm:$0xff]  }
  0x26   :  { %257 = vst.msk [vmem:[#allocation2 + $0x98] sm:$0x3] %vm238_vm1, %v2088_v32  ;;  %259 = vst.msk [vmem:[#allocation2 + $0xa8] sm:$0x3] %vm238_vm1, %v2088_v32  ;;  %1617 = vmatprep.subr.bf16.mxu1 %v2034_v39  ;;  %v312_v4 = vld [vmem:[#allocation2 + $0x2] sm:$0xff]  ;;  %v2044_v25 = vld [vmem:[%s2838_s3 + $0x78] sm:$0xff]  }
  0x27   :  { %258 = vst.msk [vmem:[#allocation2 + $0xa0] sm:$0xff] %vm236_vm0, %v2088_v32  ;;  %260 = vst.msk [vmem:[#allocation2 + $0xb0] sm:$0xff] %vm236_vm0, %v2088_v32  ;;  %1732 = vmatpush3.bf16.msra.mxu0 %v2257_v34  ;;  %v304_v5 = vld [vmem:[#allocation2 + $0x1] sm:$0xff]  ;;  %v2045_v36 = vld [vmem:[%s2838_s3 + $0x38] sm:$0xff]  }
  0x28   :  { %261 = vst.msk [vmem:[#allocation2 + $0xb8] sm:$0x3] %vm238_vm1, %v2088_v32  ;;  %263 = vst.msk [vmem:[#allocation2 + $0xc8] sm:$0x3] %vm238_vm1, %v2088_v32 }
  0x29   :  { %262 = vst.msk [vmem:[#allocation2 + $0xc0] sm:$0xff] %vm236_vm0, %v2088_v32  ;;  %264 = vst.msk [vmem:[#allocation2 + $0xd0] sm:$0xff] %vm236_vm0, %v2088_v32  ;;  %1618 = vmatpush3.bf16.msra.mxu1 %v2035_v40 }
  0x2a   :  { %1718 = vmatmul.mubr.bf16.gmra.mrb[4].mxu0 %v47_v21  ;;  %265 = vst.msk [vmem:[#allocation2 + $0xd8] sm:$0x3] %vm238_vm1, %v2088_v32  ;;  %267 = vst.msk [vmem:[#allocation2 + $0xe8] sm:$0x3] %vm238_vm1, %v2088_v32  ;;  %1619 = vmatprep.subr.bf16.mxu1 %v2036_v41  ;;  %v2043_v21 = vld [vmem:[%s2838_s3 + $0x30] sm:$0xff]  }
  0x2b   :  { %1721 = vmatprep.mubr.bf16.mxu0 %v48_v22  ;;  %266 = vst.msk [vmem:[#allocation2 + $0xe0] sm:$0xff] %vm236_vm0, %v2088_v32  ;;  %268 = vst.msk [vmem:[#allocation2 + $0xf0] sm:$0xff] %vm236_vm0, %v2088_v32 }
  0x2c   :  { %269 = vst.msk [vmem:[#allocation2 + $0xf8] sm:$0x3] %vm238_vm1, %v2088_v32  ;;  %271 = vst.msk [vmem:[#allocation2 + $0x108] sm:$0x3] %vm238_vm1, %v2088_v32 }
  0x2d   :  { %270 = vst.msk [vmem:[#allocation2 + $0x100] sm:$0xff] %vm236_vm0, %v2088_v32  ;;  %272 = vst.msk [vmem:[#allocation2 + $0x110] sm:$0xff] %vm236_vm0, %v2088_v32  ;;  %1620 = vmatpush3.bf16.msra.mxu1 %v2037_v42 }
  0x2e   :  { %273 = vst.msk [vmem:[#allocation2 + $0x118] sm:$0x3] %vm238_vm1, %v2088_v32  ;;  %275 = vst.msk [vmem:[#allocation2 + $0x128] sm:$0x3] %vm238_vm1, %v2088_v32  ;;  %1621 = vmatprep.subr.bf16.mxu1 %v2038_v54 }
  0x2f   :  { %274 = vst.msk [vmem:[#allocation2 + $0x120] sm:$0xff] %vm236_vm0, %v2088_v32  ;;  %276 = vst.msk [vmem:[#allocation2 + $0x130] sm:$0xff] %vm236_vm0, %v2088_v32 }
  0x30   :  { %277 = vst.msk [vmem:[#allocation2 + $0x138] sm:$0x3] %vm238_vm1, %v2088_v32 }
  0x31   :  { %1622 = vmatpush3.bf16.msra.mxu1 %v2039_v56 }
  0x32   :  { %1722 = vmatmul.mubr.bf16.gmra.mrb[8].mxu0 %v49_v27  ;;  %1623 = vmatprep.subr.bf16.mxu1 %v2040_v59 }
  0x33   :  { %1725 = vmatprep.mubr.bf16.mxu0 %v50_v28 }
  0x35   :  { %1624 = vmatpush3.bf16.msra.mxu1 %v2041_v62 }
  0x36   :  { %1625 = vmatprep.subr.bf16.mxu1 %v2042_v20 }
  0x39   :  { %1626 = vmatpush3.bf16.msra.mxu1 %v2043_v21 }
  0x3a   :  { %1726 = vmatmul.mubr.bf16.gmra.mrb[12].mxu0 %v51_v31  ;;  %1627 = vmatprep.subr.bf16.mxu1 %v2044_v25 }
  0x3d   :  { %1628 = vmatpush3.bf16.msra.mxu1 %v2045_v36 }
  0x3e   :  { %1769 = vmatprep.subr.bf16.mxu1 %v2250_v33 }
  0xf5   :  { %v1715_v44 = vpop.f32.mrb[0].mxu0 }
  0xf6   :  { %v166_v45 = vadd.f32 %v1715_v44, %v2288_v43  ;;  %v157_v46 = vpop.f32.mrb[1].mxu0 }
  0xf7   :  { %v158_v47 = vadd.f32 %v2288_v43, %v157_v46  ;;  %v1716_v48 = vpop.f32.mrb[2].mxu0 }
  0xf8   :  { %v222_v49 = vmax.f32 %v166_v45, 0.0  ;;  %v169_v50 = vadd.f32 %v1716_v48, %v2288_v43  ;;  %v160_v51 = vpop.f32.mrb[3].mxu0 }
  0xf9   :  { %v220_v52 = vmax.f32 %v158_v47, 0.0  ;;  %v161_v53 = vadd.f32 %v2288_v43, %v160_v51 }
  0xfa   :  { %281 = vst.msk [vmem:[#allocation2 + $0x31] sm:$0xff] %vm236_vm0, %v222_v49  ;;  %v223_v55 = vmax.f32 %v169_v50, 0.0 }
  0xfb   :  { %279 = vst.msk [vmem:[#allocation2 + $0x11] sm:$0xff] %vm236_vm0, %v220_v52  ;;  %v221_v57 = vmax.f32 %v161_v53, 0.0  ;;  %v368_v53 = vld [vmem:[#allocation2 + $0x92] sm:$0xff] }
  0xfc   :  { %282 = vst.msk [vmem:[#allocation2 + $0x41] sm:$0xff] %vm236_vm0, %v223_v55 }
  0xfd   :  { %280 = vst.msk [vmem:[#allocation2 + $0x21] sm:$0xff] %vm236_vm0, %v221_v57  ;;  %v1719_v58 = vpop.f32.mrb[4].mxu0 }
  0xfe   :  { %v182_v60 = vadd.f32 %v1719_v58, %v2288_v43  ;;  %v173_v61 = vpop.f32.mrb[5].mxu0 }
  0xff   :  { %v174_v63 = vadd.f32 %v2288_v43, %v173_v61  ;;  %v1720_v0 = vpop.f32.mrb[6].mxu0 }
 0x100   :  { %v226_v1 = vmax.f32 %v182_v60, 0.0  ;;  %v185_v2 = vadd.f32 %v1720_v0, %v2288_v43  ;;  %v176_v3 = vpop.f32.mrb[7].mxu0 }
 0x101   :  { %v224_v6 = vmax.f32 %v174_v63, 0.0  ;;  %v177_v7 = vadd.f32 %v2288_v43, %v176_v3  ;;  %v2319_v14 = vld [vmem:[#allocation2 + $0x32] sm:$0xff] }
 0x102   :  { %285 = vst.msk [vmem:[#allocation2 + $0x71] sm:$0xff] %vm236_vm0, %v226_v1  ;;  %v227_v8 = vmax.f32 %v185_v2, 0.0  ;;  %v313_v9 = vld [vmem:[#allocation2 + $0x12] sm:$0xff] }
 0x103   :  { %v2315_v10 = vld [vmem:[#allocation2 + $0x11] sm:$0xff]  ;;  %283 = vst.msk [vmem:[#allocation2 + $0x51] sm:$0xff] %vm236_vm0, %v224_v6  ;;  %v225_v11 = vmax.f32 %v177_v7, 0.0  ;;  %v1785_v12 = vpack.i.bf16 %v313_v9, %v312_v4  ;;  %v2324_v16 = vld [vmem:[#allocation2 + $0x40] sm:$0xff] }
 0x104   :  { %v1780_v13 = vpack.i.bf16 %v2315_v10, %v304_v5  ;;  %286 = vst.msk [vmem:[#allocation2 + $0x81] sm:$0xff] %vm236_vm0, %v227_v8  ;;  %v2322_v15 = vld [vmem:[#allocation2 + $0x22] sm:$0xff]  ;;  %v2339_v22 = vld [vmem:[#allocation2 + $0x30] sm:$0xff] }
 0x105   :  { %v2326_v17 = vld [vmem:[#allocation2 + $0x42] sm:$0xff]  ;;  %284 = vst.msk [vmem:[#allocation2 + $0x61] sm:$0xff] %vm236_vm0, %v225_v11  ;;  %1786 = vrot.lane.b32.xlu1 %v1785_v12, %s2089_s29  ;;  %v927_v18 = vpack.c.bf16 %v2319_v14, %v2322_v15  ;;  %v1723_v19 = vpop.f32.mrb[8].mxu0  ;;  %v1795_v26 = vpack.i.bf16 %v2324_v16, %v2339_v22  ;;  %v1800_v45 = vpack.i.bf16 %v2322_v15, %v313_v9  ;;  %v2381_v51 = vld [vmem:[#allocation2 + $0x10] sm:$0xff] }
 0x106   :  { %1781 = vrot.lane.b32.xlu0 %v1780_v13, %s2090_s30  ;;  %v198_v23 = vadd.f32 %v1723_v19, %v2288_v43  ;;  %v189_v24 = vpop.f32.mrb[9].mxu0  ;;  %v1790_v27 = vpack.i.bf16 %v2326_v17, %v2319_v14  ;;  %v2351_v30 = vld [vmem:[#allocation2 + $0x20] sm:$0xff]  ;;  %v2387_v57 = vld [vmem:[#allocation2 + $0x31] sm:$0xff]  ;;  %v1825_v9 = vpack.i.bf16 %v2319_v14, %v2322_v15 }
 0x107   :  { %1733 = vmatprep.mubr.msk.bf16.mxu0 %vm236_vm0, %v927_v18  ;;  %v190_v28 = vadd.f32 %v2288_v43, %v189_v24  ;;  %v1724_v29 = vpop.f32.mrb[10].mxu0  ;;  %v1805_v44 = vpack.i.bf16 %v2339_v22, %v2351_v30  ;;  %v2376_v48 = vld [vmem:[#allocation2 + $0x21] sm:$0xff]  ;;  %v1815_v56 = vpack.i.bf16 %v2351_v30, %v2381_v51  ;;  %v352_v24 = vld [vmem:[#allocation2 + $0x90] sm:$0xff] }
 0x108   :  { %v230_v31 = vmax.f32 %v198_v23, 0.0  ;;  %v201_v32 = vadd.f32 %v1724_v29, %v2288_v43  ;;  %v192_v35 = vpop.f32.mrb[11].mxu0  ;;  %v1810_v60 = vpack.i.bf16 %v2387_v57, %v2376_v48  ;;  %v2417_v11 = vld [vmem:[#allocation2 + $0x41] sm:$0xff] }
 0x109   :  { %1796 = vrot.lane.b32.xlu1 %v1795_v26, %s2091_s16  ;;  %v228_v37 = vmax.f32 %v190_v28, 0.0  ;;  %v193_v38 = vadd.f32 %v2288_v43, %v192_v35  ;;  %v2362_v40 = vld [vmem:[#allocation2 + $0x72] sm:$0xff] }
 0x10a   :  { %1791 = vrot.lane.b32.xlu0 %v1790_v27, %s2090_s30  ;;  %v2360_v39 = vld [vmem:[#allocation2 + $0x52] sm:$0xff]  ;;  %290 = vst.msk [vmem:[#allocation2 + $0xd1] sm:$0xff] %vm236_vm0, %v230_v31  ;;  %v231_v41 = vmax.f32 %v201_v32, 0.0 }
 0x10b   :  { %v930_v42 = vpack.c.bf16 %v2360_v39, %v2326_v17  ;;  %288 = vst.msk [vmem:[#allocation2 + $0xb1] sm:$0xff] %vm236_vm0, %v228_v37  ;;  %v229_v47 = vmax.f32 %v193_v38, 0.0  ;;  %v367_v52 = vld [vmem:[#allocation2 + $0x82] sm:$0xff]  ;;  %v2396_v1 = vld [vmem:[#allocation2 + $0x50] sm:$0xff]  ;;  %v1845_v26 = vpack.i.bf16 %v2360_v39, %v2326_v17 }
 0x10c   :  { %v2371_v46 = vld [vmem:[#allocation2 + $0x62] sm:$0xff]  ;;  %291 = vst.msk [vmem:[#allocation2 + $0xe1] sm:$0xff] %vm236_vm0, %v231_v41  ;;  %v936_v0 = vpack.c.bf16 %v368_v53, %v367_v52  ;;  %v1830_v6 = vpack.i.bf16 %v2396_v1, %v2324_v16  ;;  %v1850_v15 = vpack.i.bf16 %v367_v52, %v2362_v40  ;;  %v2442_v28 = vld [vmem:[#allocation2 + $0x70] sm:$0xff] }
 0x10d   :  { %1734 = vmatmul.mubr.msk.bf16.vlgmr.msra.gmra.mrb[16].mxu0 %vm236_vm0, %v930_v42  ;;  %1806 = vrot.lane.b32.xlu1 %v1805_v44, %s2089_s29  ;;  %v933_v49 = vpack.c.bf16 %v2362_v40, %v2371_v46  ;;  %v1727_v50 = vpop.f32.mrb[12].mxu0  ;;  %289 = vst.msk [vmem:[#allocation2 + $0xc1] sm:$0xff] %vm236_vm0, %v229_v47  ;;  %v351_v23 = vld [vmem:[#allocation2 + $0x80] sm:$0xff]  ;;  %v360_v31 = vld [vmem:[#allocation2 + $0x91] sm:$0xff]  ;;  %v1870_v37 = vpack.i.bf16 %v2371_v46, %v2360_v39 }
 0x10e   :  { %1801 = vrot.lane.b32.xlu0 %v1800_v45, %s2090_s30  ;;  %v214_v54 = vadd.f32 %v1727_v50, %v2288_v43  ;;  %v205_v55 = vpop.f32.mrb[13].mxu0  ;;  %v1855_v27 = vpack.i.bf16 %v352_v24, %v351_v23  ;;  %v2445_v29 = vld [vmem:[#allocation2 + $0x81] sm:$0xff]  ;;  %v1865_v32 = vpack.i.bf16 %v351_v23, %v2442_v28  ;;  %v2460_v41 = vld [vmem:[#allocation2 + $0x71] sm:$0xff]  ;;  %v1895_v39 = vpack.i.bf16 %v2362_v40, %v2371_v46 }
 0x10f   :  { %1737 = vmatprep.mubr.msk.bf16.mxu0 %vm236_vm0, %v933_v49  ;;  %v206_v58 = vadd.f32 %v2288_v43, %v205_v55  ;;  %v1728_v59 = vpop.f32.mrb[14].mxu0  ;;  %v1860_v35 = vpack.i.bf16 %v360_v31, %v2445_v29  ;;  %v2450_v36 = vld [vmem:[#allocation2 + $0x60] sm:$0xff] }
 0x110   :  { %v234_v61 = vmax.f32 %v214_v54, 0.0  ;;  %v217_v62 = vadd.f32 %v1728_v59, %v2288_v43  ;;  %v208_v63 = vpop.f32.mrb[15].mxu0  ;;  %v1885_v17 = vpack.i.bf16 %v2450_v36, %v2396_v1  ;;  %v2458_v38 = vld [vmem:[#allocation2 + $0x61] sm:$0xff]  ;;  %v1875_v44 = vpack.i.bf16 %v2442_v28, %v2450_v36 }
 0x111   :  { %1816 = vrot.lane.b32.xlu1 %v1815_v56, %s2091_s16  ;;  %v232_v2 = vmax.f32 %v206_v58, 0.0  ;;  %v209_v3 = vadd.f32 %v2288_v43, %v208_v63  ;;  %v2405_v7 = vld [vmem:[#allocation2 + $0xd2] sm:$0xff]  ;;  %v1890_v42 = vpack.i.bf16 %v2460_v41, %v2458_v38  ;;  %v620_v45 = vld [vmem:[#allocation2 + $0xa1] sm:$0xff] }
 0x112   :  { %1811 = vrot.lane.b32.xlu0 %v1810_v60, %s2091_s16  ;;  %294 = vst.msk [vmem:[#allocation2 + $0x111] sm:$0xff] %vm236_vm0, %v234_v61  ;;  %v235_v4 = vmax.f32 %v217_v62, 0.0  ;;  %v2409_v43 = vld [vmem:[#allocation2 + $0x51] sm:$0xff]  ;;  %v628_v52 = vld [vmem:[#allocation2 + $0xa2] sm:$0xff] }
 0x113   :  { %292 = vst.msk [vmem:[#allocation2 + $0xf1] sm:$0xff] %vm236_vm0, %v232_v2  ;;  %v233_v5 = vmax.f32 %v209_v3, 0.0  ;;  %v1835_v13 = vpack.i.bf16 %v2409_v43, %v2417_v11  ;;  %v2423_v18 = vld [vmem:[#allocation2 + $0xe2] sm:$0xff]  ;;  %v2472_v47 = vld [vmem:[#allocation2 + $0xb1] sm:$0xff] }
 0x114   :  { %295 = vst.msk [vmem:[#allocation2 + $0x121] sm:$0xff] %vm236_vm0, %v235_v4  ;;  %v2412_v8 = vld [vmem:[#allocation2 + $0xc2] sm:$0xff]  ;;  %v1900_v49 = vpack.i.bf16 %v2472_v47, %v620_v45  ;;  %v1910_v50 = vpack.i.bf16 %v2423_v18, %v2405_v7  ;;  %v629_v53 = vld [vmem:[#allocation2 + $0xb2] sm:$0xff] }
 0x115   :  { %1738 = vmatmul.mubr.msk.bf16.gmra.mrb[20].mxu0 %vm236_vm0, %v936_v0  ;;  %1821 = vrot.lane.b32.xlu1 %v1810_v60, %s2090_s30  ;;  %293 = vst.msk [vmem:[#allocation2 + $0x101] sm:$0xff] %vm236_vm0, %v233_v5  ;;  %v939_v12 = vpack.c.bf16 %v2405_v7, %v2412_v8  ;;  %v1905_v54 = vpack.i.bf16 %v629_v53, %v628_v52  ;;  %v2482_v46 = vld [vmem:[#allocation2 + $0xd0] sm:$0xff]  ;;  %v2484_v55 = vld [vmem:[#allocation2 + $0xe0] sm:$0xff] }
 0x116   :  { %1831 = vrot.lane.b32.xlu0 %v1830_v6, %s2089_s29  ;;  %v1920_v40 = vpack.i.bf16 %v2412_v8, %v629_v53  ;;  %v2487_v56 = vld [vmem:[#allocation2 + $0xc0] sm:$0xff]  ;;  %v1915_v58 = vpack.i.bf16 %v2484_v55, %v2482_v46  ;;  %v2494_v60 = vld [vmem:[#allocation2 + $0xb0] sm:$0xff]  ;;  %v1945_v6 = vpack.i.bf16 %v2405_v7, %v2412_v8 }
 0x117   :  { %v1925_v59 = vpack.i.bf16 %v2482_v46, %v2487_v56  ;;  %v2497_v61 = vld [vmem:[#allocation2 + $0xc1] sm:$0xff]  ;;  %v2499_v62 = vld [vmem:[#allocation2 + $0xd1] sm:$0xff]  ;;  %v1935_v63 = vpack.i.bf16 %v2487_v56, %v2494_v60 }
 0x118   :  { %v1930_v0 = vpack.i.bf16 %v2499_v62, %v2497_v61  ;;  %v2513_v4 = vld [vmem:[#allocation2 + $0xe1] sm:$0xff] }
 0x119   :  { %1826 = vrot.lane.b32.xlu1 %v1825_v9, %s2089_s29  ;;  %v2429_v20 = vld [vmem:[#allocation2 + $0x112] sm:$0xff] }
 0x11a   :  { %1836 = vrot.lane.b32.xlu0 %v1835_v13, %s2091_s16  ;;  %v2427_v19 = vld [vmem:[#allocation2 + $0xf2] sm:$0xff] }
 0x11b   :  { %v2507_v2 = vld [vmem:[#allocation2 + $0xf0] sm:$0xff]  ;;  %v1965_v23 = vpack.i.bf16 %v2427_v19, %v2423_v18 }
 0x11c   :  { %v2434_v21 = vld [vmem:[#allocation2 + $0x102] sm:$0xff]  ;;  %v1950_v3 = vpack.i.bf16 %v2507_v2, %v2484_v55  ;;  %v2515_v5 = vld [vmem:[#allocation2 + $0xf1] sm:$0xff] }
 0x11d   :  { %1841 = vrot.lane.b32.xlu1 %v1835_v13, %s2090_s30  ;;  %v1955_v9 = vpack.i.bf16 %v2515_v5, %v2513_v4  ;;  %v2523_v13 = vld [vmem:[#allocation2 + $0x122] sm:$0xff]  ;;  %v1975_v24 = vpack.i.bf16 %v2434_v21, %v2427_v19 }
 0x11e   :  { %1851 = vrot.lane.b32.xlu0 %v1850_v15, %s2090_s30  ;;  %v1970_v15 = vpack.i.bf16 %v2523_v13, %v2429_v20 }
 0x121   :  { %1846 = vrot.lane.b32.xlu1 %v1845_v26, %s2089_s29  ;;  %v2534_v26 = vld [vmem:[#allocation2 + $0x100] sm:$0xff] }
 0x122   :  { %1856 = vrot.lane.b32.xlu0 %v1855_v27, %s2089_s29  ;;  %v2537_v27 = vld [vmem:[#allocation2 + $0x110] sm:$0xff]  ;;  %v1995_v31 = vpack.i.bf16 %v2534_v26, %v2507_v2 }
 0x125   :  { %1866 = vrot.lane.b32.xlu1 %v1865_v32, %s2091_s16  ;;  %v1980_v32 = vpack.i.bf16 %v2537_v27, %v2534_v26 }
 0x126   :  { %1861 = vrot.lane.b32.xlu0 %v1860_v35, %s2091_s16  ;;  %v2544_v35 = vld [vmem:[#allocation2 + $0x101] sm:$0xff] }
 0x129   :  { %1886 = vrot.lane.b32.xlu1 %v1885_v17, %s2091_s16  ;;  %v2546_v17 = vld [vmem:[#allocation2 + $0x111] sm:$0xff] }
 0x12a   :  { %1871 = vrot.lane.b32.xlu0 %v1870_v37, %s2090_s30  ;;  %v2000_v37 = vpack.i.bf16 %v2546_v17, %v2544_v35 }
 0x12d   :  { %1891 = vrot.lane.b32.xlu1 %v1890_v42, %s2090_s30 }
 0x12e   :  { %1876 = vrot.lane.b32.xlu0 %v1875_v44, %s2089_s29  ;;  %v668_v44 = vld [vmem:[#allocation2 + $0x130] sm:$0xff] }
 0x131   :  { %1896 = vrot.lane.b32.xlu1 %v1895_v39, %s2089_s29  ;;  %v2005_v39 = vpack.i.bf16 %v2429_v20, %v2434_v21 }
 0x132   :  { %1881 = vrot.lane.b32.xlu0 %v1890_v42, %s2091_s16  ;;  %v667_v42 = vld [vmem:[#allocation2 + $0x120] sm:$0xff] }
 0x133   :  { %v1990_v45 = vpack.i.bf16 %v668_v44, %v667_v42  ;;  %v2015_v52 = vpack.i.bf16 %v667_v42, %v2537_v27 }
 0x135   :  { %1901 = vrot.lane.b32.xlu1 %v1900_v49, %s2090_s30  ;;  %v2557_v49 = vld [vmem:[#allocation2 + $0x121] sm:$0xff] }
 0x136   :  { %1911 = vrot.lane.b32.xlu0 %v1910_v50, %s2090_s30  ;;  %v676_v50 = vld [vmem:[#allocation2 + $0x131] sm:$0xff] }
 0x137   :  { %v2010_v53 = vpack.i.bf16 %v676_v50, %v2557_v49 }
 0x139   :  { %1906 = vrot.lane.b32.xlu1 %v1905_v54, %s2089_s29 }
 0x13a   :  { %1921 = vrot.lane.b32.xlu0 %v1920_v40, %s2090_s30 }
 0x13d   :  { %1916 = vrot.lane.b32.xlu1 %v1915_v58, %s2091_s16 }
 0x13e   :  { %1926 = vrot.lane.b32.xlu0 %v1925_v59, %s2089_s29 }
 0x141   :  { %1936 = vrot.lane.b32.xlu1 %v1935_v63, %s2091_s16 }
 0x142   :  { %1931 = vrot.lane.b32.xlu0 %v1930_v0, %s2091_s16 }
 0x145   :  { %1941 = vrot.lane.b32.xlu1 %v1930_v0, %s2090_s30 }
 0x146   :  { %1951 = vrot.lane.b32.xlu0 %v1950_v3, %s2089_s29  ;;  %v296_v3 = vld [vmem:[#allocation2] sm:$0xff] }
 0x149   :  { %1946 = vrot.lane.b32.xlu1 %v1945_v6, %s2089_s29 }
 0x14a   :  { %1956 = vrot.lane.b32.xlu0 %v1955_v9, %s2091_s16 }
 0x14d   :  { %1961 = vrot.lane.b32.xlu1 %v1955_v9, %s2090_s30 }
 0x14e   :  { %1971 = vrot.lane.b32.xlu0 %v1970_v15, %s2090_s30 }
 0x151   :  { %1966 = vrot.lane.b32.xlu1 %v1965_v23, %s2089_s29 }
 0x152   :  { %1976 = vrot.lane.b32.xlu0 %v1975_v24, %s2090_s30 }
 0x155   :  { %1996 = vrot.lane.b32.xlu1 %v1995_v31, %s2091_s16 }
 0x156   :  { %1981 = vrot.lane.b32.xlu0 %v1980_v32, %s2089_s29 }
 0x159   :  { %2001 = vrot.lane.b32.xlu1 %v2000_v37, %s2090_s30 }
 0x15a   :  { %1986 = vrot.lane.b32.xlu0 %v2000_v37, %s2091_s16 }
 0x15d   :  { %2006 = vrot.lane.b32.xlu1 %v2005_v39, %s2089_s29 }
 0x15e   :  { %1991 = vrot.lane.b32.xlu0 %v1990_v45, %s2089_s29 }
 0x161   :  { %2016 = vrot.lane.b32.xlu1 %v2015_v52, %s2091_s16 }
 0x162   :  { %2011 = vrot.lane.b32.xlu0 %v2010_v53, %s2091_s16 }
 0x177   :  { %v1787_v54 = vpop.permute.xlu1 %1786 }
 0x178   :  { %v1782_v40 = vpop.permute.xlu0 %1781  ;;  %v1789_v15 = vunpack.i.h.bf16 %v1787_v54  ;;  %v1788_v23 = vunpack.i.l.bf16 %v1787_v54 }
 0x179   :  { %v1784_v63 = vunpack.i.h.bf16 %v1782_v40  ;;  %v1783_v0 = vunpack.i.l.bf16 %v1782_v40 }
 0x17b   :  { %v2564_v58 = vpop.permute.xlu1 %1796  ;;  %v561_v32 = vsel %vm236_vm0, %v296_v3, %v1783_v0  ;;  %v562_v37 = vsel %vm236_vm0, %v2381_v51, %v1784_v63 }
 0x17c   :  { %v1792_v59 = vpop.permute.xlu0 %1791  ;;  %v570_v0 = vsel %vm569_vm2, %v561_v32, %v1788_v23  ;;  %v571_v3 = vsel %vm569_vm2, %v562_v37, %v1789_v15 }
 0x17d   :  { %v1794_v25 = vunpack.i.h.bf16 %v1792_v59 }
 0x17f   :  { %v1807_v6 = vpop.permute.xlu1 %1806 }
 0x180   :  { %v1802_v9 = vpop.permute.xlu0 %1801  ;;  %v1809_v42 = vunpack.i.h.bf16 %v1807_v6  ;;  %v1808_v44 = vunpack.i.l.bf16 %v1807_v6 }
 0x181   :  { %v1804_v24 = vunpack.i.h.bf16 %v1802_v9  ;;  %v1803_v31 = vunpack.i.l.bf16 %v1802_v9 }
 0x183   :  { %v1817_v39 = vpop.permute.xlu1 %1816  ;;  %v587_v45 = vsel %vm236_vm0, %v2315_v10, %v1803_v31  ;;  %v588_v50 = vsel %vm236_vm0, %v2376_v48, %v1804_v24 }
 0x184   :  { %v1819_v52 = vunpack.i.h.bf16 %v1817_v39  ;;  %v1818_v53 = vunpack.i.l.bf16 %v1817_v39  ;;  %v1812_v54 = vpop.permute.xlu0 %1811  ;;  %v595_v51 = vsel %vm569_vm2, %v587_v45, %v1808_v44  ;;  %v596_v63 = vsel %vm569_vm2, %v588_v50, %v1809_v42 }
 0x185   :  { %v1814_v40 = vunpack.i.h.bf16 %v1812_v54  ;;  %v1813_v9 = vunpack.i.l.bf16 %v1812_v54  ;;  %v1793_v54 = vunpack.i.l.bf16 %v1792_v59  ;;  %v1799_v42 = vunpack.i.h.bf16 %v2564_v58 }
 0x186   :  { %v579_v6 = vsel %vm578_vm3, %v570_v0, %v1818_v53  ;;  %v580_v10 = vsel %vm578_vm3, %v571_v3, %v1819_v52  ;;  %v1798_v45 = vunpack.i.l.bf16 %v2564_v58  ;;  %v590_v52 = vsel %vm236_vm0, %v2417_v11, %v1794_v25 }
 0x187   :  { %v1822_v31 = vpop.permute.xlu1 %1821  ;;  %v603_v48 = vsel %vm578_vm3, %v595_v51, %v1813_v9  ;;  %v604_v24 = vsel %vm578_vm3, %v596_v63, %v1814_v40  ;;  %v925_v39 = vpack.c.bf16 %v580_v10, %v579_v6  ;;  %v589_v53 = vsel %vm236_vm0, %v2387_v57, %v1793_v54 }
 0x188   :  { %v1832_v14 = vpop.permute.xlu0 %1831  ;;  %v926_v23 = vpack.c.bf16 %v604_v24, %v603_v48  ;;  %v1824_v32 = vunpack.i.h.bf16 %v1822_v31  ;;  %v1823_v15 = vunpack.i.l.bf16 %v1822_v31 }
 0x189   :  { %v1834_v37 = vunpack.i.h.bf16 %v1832_v14  ;;  %v1833_v44 = vunpack.i.l.bf16 %v1832_v14 }
 0x18a   :  { %1156 = vmatprep.mubr.bf16.mxu1 %v926_v23  ;;  %v564_v14 = vsel %vm236_vm0, %v2339_v22, %v1824_v32  ;;  %v563_v0 = vsel %vm236_vm0, %v2351_v30, %v1823_v15 }
 0x18b   :  { %1157 = vmatmul.mubr.bf16.vlgmr.msra.gmra.mrb[0].mxu1 %v925_v39  ;;  %v1827_v50 = vpop.permute.xlu1 %1826  ;;  %v597_v11 = vsel %vm569_vm2, %v589_v53, %v1833_v44  ;;  %v598_v25 = vsel %vm569_vm2, %v590_v52, %v1834_v37 }
 0x18c   :  { %v1829_v59 = vunpack.i.h.bf16 %v1827_v50  ;;  %v1828_v40 = vunpack.i.l.bf16 %v1827_v50  ;;  %v1837_v9 = vpop.permute.xlu0 %1836  ;;  %1771 = vmatpush3.bf16.msra.mxu1 %v2250_v33 }
 0x18d   :  { %v1839_v58 = vunpack.i.h.bf16 %v1837_v9  ;;  %v1838_v3 = vunpack.i.l.bf16 %v1837_v9  ;;  %1770 = vmatprep.subr.bf16.mxu1 %v2257_v34 }
 0x18e   :  { %v572_v57 = vsel %vm569_vm2, %v563_v0, %v1828_v40  ;;  %v573_v51 = vsel %vm569_vm2, %v564_v14, %v1829_v59 }
 0x18f   :  { %v1842_v63 = vpop.permute.xlu1 %1841  ;;  %v605_v33 = vsel %vm578_vm3, %v597_v11, %v1838_v3  ;;  %v606_v22 = vsel %vm578_vm3, %v598_v25, %v1839_v58  ;;  %v581_v6 = vsel %vm578_vm3, %v572_v57, %v1798_v45  ;;  %v582_v30 = vsel %vm578_vm3, %v573_v51, %v1799_v42 }
 0x190   :  { %v1852_v10 = vpop.permute.xlu0 %1851  ;;  %v929_v31 = vpack.c.bf16 %v606_v22, %v605_v33  ;;  %v928_v48 = vpack.c.bf16 %v582_v30, %v581_v6  ;;  %1772 = vmatpush3.bf16.msra.mxu1 %v2257_v34  ;;  %v1844_v37 = vunpack.i.h.bf16 %v1842_v63  ;;  %v1843_v44 = vunpack.i.l.bf16 %v1842_v63 }
 0x191   :  { %v1854_v50 = vunpack.i.h.bf16 %v1852_v10  ;;  %v1853_v45 = vunpack.i.l.bf16 %v1852_v10 }
 0x192   :  { %1164 = vmatprep.mubr.bf16.mxu1 %v929_v31  ;;  %v566_v3 = vsel %vm236_vm0, %v2396_v1, %v1844_v37  ;;  %v565_v11 = vsel %vm236_vm0, %v2324_v16, %v1843_v44 }
 0x193   :  { %1165 = vmatmul.mubr.bf16.gmra.mrb[4].mxu1 %v928_v48  ;;  %v1847_v24 = vpop.permute.xlu1 %1846  ;;  %v594_v51 = vsel %vm236_vm0, %v2445_v29, %v1854_v50  ;;  %v593_v63 = vsel %vm236_vm0, %v2460_v41, %v1853_v45 }
 0x194   :  { %v1857_v39 = vpop.permute.xlu0 %1856  ;;  %v1849_v52 = vunpack.i.h.bf16 %v1847_v24  ;;  %v1848_v42 = vunpack.i.l.bf16 %v1847_v24 }
 0x195   :  { %v1859_v53 = vunpack.i.h.bf16 %v1857_v39  ;;  %v1858_v59 = vunpack.i.l.bf16 %v1857_v39 }
 0x196   :  { %v574_v6 = vsel %vm569_vm2, %v565_v11, %v1848_v42  ;;  %v575_v30 = vsel %vm569_vm2, %v566_v3, %v1849_v52 }
 0x197   :  { %v2602_v54 = vpop.permute.xlu1 %1866  ;;  %v601_v10 = vsel %vm569_vm2, %v593_v63, %v1858_v59  ;;  %v602_v1 = vsel %vm569_vm2, %v594_v51, %v1859_v53 }
 0x198   :  { %v1862_v23 = vpop.permute.xlu0 %1861 }
 0x199   :  { %v1864_v9 = vunpack.i.h.bf16 %v1862_v23  ;;  %v1863_v34 = vunpack.i.l.bf16 %v1862_v23 }
 0x19b   :  { %v1887_v32 = vpop.permute.xlu1 %1886  ;;  %v609_v29 = vsel %vm578_vm3, %v601_v10, %v1863_v34  ;;  %v610_v41 = vsel %vm578_vm3, %v602_v1, %v1864_v9 }
 0x19c   :  { %v1872_v15 = vpop.permute.xlu0 %1871  ;;  %v1889_v14 = vunpack.i.h.bf16 %v1887_v32  ;;  %v1888_v0 = vunpack.i.l.bf16 %v1887_v32 }
 0x19d   :  { %v1874_v25 = vunpack.i.h.bf16 %v1872_v15  ;;  %v1873_v57 = vunpack.i.l.bf16 %v1872_v15 }
 0x19e   :  { %v583_v48 = vsel %vm578_vm3, %v574_v6, %v1888_v0  ;;  %v584_v24 = vsel %vm578_vm3, %v575_v30, %v1889_v14  ;;  %v935_v0 = vpack.c.bf16 %v610_v41, %v609_v29  ;;  %v612_v6 = vld [vmem:[#allocation2 + $0xa0] sm:$0xff] }
 0x19f   :  { %v1892_v40 = vpop.permute.xlu1 %1891  ;;  %v592_v39 = vsel %vm236_vm0, %v2458_v38, %v1874_v25  ;;  %v591_v23 = vsel %vm236_vm0, %v2409_v43, %v1873_v57  ;;  %v931_v14 = vpack.c.bf16 %v584_v24, %v583_v48  ;;  %v1869_v25 = vunpack.i.h.bf16 %v2602_v54 }
 0x1a0   :  { %v1877_v58 = vpop.permute.xlu0 %1876  ;;  %v1894_v37 = vunpack.i.h.bf16 %v1892_v40  ;;  %v1893_v44 = vunpack.i.l.bf16 %v1892_v40  ;;  %v1868_v57 = vunpack.i.l.bf16 %v2602_v54 }
 0x1a1   :  { %v1879_v33 = vunpack.i.h.bf16 %v1877_v58  ;;  %v1878_v22 = vunpack.i.l.bf16 %v1877_v58 }
 0x1a2   :  { %v568_v43 = vsel %vm236_vm0, %v2442_v28, %v1894_v37  ;;  %v567_v40 = vsel %vm236_vm0, %v2450_v36, %v1893_v44 }
 0x1a3   :  { %v1897_v31 = vpop.permute.xlu1 %1896  ;;  %v599_v50 = vsel %vm569_vm2, %v591_v23, %v1878_v22  ;;  %v600_v45 = vsel %vm569_vm2, %v592_v39, %v1879_v33 }
 0x1a4   :  { %v1882_v16 = vpop.permute.xlu0 %1881  ;;  %v1899_v52 = vunpack.i.h.bf16 %v1897_v31  ;;  %v1898_v42 = vunpack.i.l.bf16 %v1897_v31 }
 0x1a5   :  { %v1884_v32 = vunpack.i.h.bf16 %v1882_v16  ;;  %v1883_v15 = vunpack.i.l.bf16 %v1882_v16 }
 0x1a6   :  { %v576_v58 = vsel %vm569_vm2, %v567_v40, %v1898_v42  ;;  %v577_v3 = vsel %vm569_vm2, %v568_v43, %v1899_v52 }
 0x1a7   :  { %v1902_v53 = vpop.permute.xlu1 %1901  ;;  %v607_v59 = vsel %vm578_vm3, %v599_v50, %v1883_v15  ;;  %v608_v9 = vsel %vm578_vm3, %v600_v45, %v1884_v32  ;;  %v585_v63 = vsel %vm578_vm3, %v576_v58, %v1868_v57  ;;  %v586_v28 = vsel %vm578_vm3, %v577_v3, %v1869_v25 }
 0x1a8   :  { %v1912_v34 = vpop.permute.xlu0 %1911  ;;  %v932_v38 = vpack.c.bf16 %v608_v9, %v607_v59  ;;  %v1904_v33 = vunpack.i.h.bf16 %v1902_v53  ;;  %v1903_v36 = vunpack.i.l.bf16 %v1902_v53  ;;  %v934_v48 = vpack.c.bf16 %v586_v28, %v585_v63 }
 0x1a9   :  { %v1914_v39 = vunpack.i.h.bf16 %v1912_v34 }
 0x1aa   :  { %1172 = vmatprep.mubr.bf16.mxu1 %v932_v38  ;;  %v878_v54 = vsel %vm236_vm0, %v2494_v60, %v1904_v33  ;;  %v877_v41 = vsel %vm236_vm0, %v612_v6, %v1903_v36 }
 0x1ab   :  { %1173 = vmatmul.mubr.bf16.gmra.mrb[8].mxu1 %v931_v14  ;;  %v1907_v11 = vpop.permute.xlu1 %1906  ;;  %v1913_v14 = vunpack.i.l.bf16 %v1912_v34 }
 0x1ac   :  { %v1922_v51 = vpop.permute.xlu0 %1921  ;;  %1180 = vmatprep.mubr.bf16.mxu1 %v935_v0  ;;  %v1909_v30 = vunpack.i.h.bf16 %v1907_v11  ;;  %v1908_v10 = vunpack.i.l.bf16 %v1907_v11 }
 0x1ad   :  { %v1924_v31 = vunpack.i.h.bf16 %v1922_v51  ;;  %v1923_v16 = vunpack.i.l.bf16 %v1922_v51  ;;  %v904_v51 = vsel %vm236_vm0, %v2513_v4, %v1914_v39  ;;  %v903_v63 = vsel %vm236_vm0, %v2499_v62, %v1913_v14 }
 0x1ae   :  { %v885_v32 = vsel %vm569_vm2, %v877_v41, %v1908_v10  ;;  %v886_v15 = vsel %vm569_vm2, %v878_v54, %v1909_v30 }
 0x1af   :  { %v2638_v22 = vpop.permute.xlu1 %1916  ;;  %v902_v45 = vsel %vm236_vm0, %v2497_v61, %v1924_v31  ;;  %v901_v52 = vsel %vm236_vm0, %v2472_v47, %v1923_v16 }
 0x1b0   :  { %v1927_v1 = vpop.permute.xlu0 %1926  ;;  %v1919_v28 = vunpack.i.h.bf16 %v2638_v22  ;;  %v1918_v33 = vunpack.i.l.bf16 %v2638_v22 }
 0x1b1   :  { %v1929_v24 = vunpack.i.h.bf16 %v1927_v1  ;;  %v1928_v29 = vunpack.i.l.bf16 %v1927_v1 }
 0x1b3   :  { %1181 = vmatmul.mubr.bf16.gmra.mrb[12].mxu1 %v934_v48  ;;  %v1937_v23 = vpop.permute.xlu1 %1936  ;;  %v909_v53 = vsel %vm569_vm2, %v901_v52, %v1928_v29  ;;  %v910_v59 = vsel %vm569_vm2, %v902_v45, %v1929_v24 }
 0x1b4   :  { %v1939_v37 = vunpack.i.h.bf16 %v1937_v23  ;;  %v1938_v44 = vunpack.i.l.bf16 %v1937_v23  ;;  %v1932_v50 = vpop.permute.xlu0 %1931 }
 0x1b5   :  { %v1934_v42 = vunpack.i.h.bf16 %v1932_v50  ;;  %v1933_v60 = vunpack.i.l.bf16 %v1932_v50 }
 0x1b6   :  { %v893_v9 = vsel %vm578_vm3, %v885_v32, %v1938_v44  ;;  %v894_v38 = vsel %vm578_vm3, %v886_v15, %v1939_v37 }
 0x1b7   :  { %v1942_v43 = vpop.permute.xlu1 %1941  ;;  %v917_v40 = vsel %vm578_vm3, %v909_v53, %v1933_v60  ;;  %v918_v0 = vsel %vm578_vm3, %v910_v59, %v1934_v42  ;;  %v937_v61 = vpack.c.bf16 %v894_v38, %v893_v9 }
 0x1b8   :  { %v1952_v58 = vpop.permute.xlu0 %1951  ;;  %v938_v3 = vpack.c.bf16 %v918_v0, %v917_v40  ;;  %v1944_v47 = vunpack.i.h.bf16 %v1942_v43  ;;  %v1943_v11 = vunpack.i.l.bf16 %v1942_v43 }
 0x1b9   :  { %v1954_v25 = vunpack.i.h.bf16 %v1952_v58  ;;  %v1953_v57 = vunpack.i.l.bf16 %v1952_v58 }
 0x1ba   :  { %1188 = vmatprep.mubr.bf16.mxu1 %v938_v3  ;;  %v880_v10 = vsel %vm236_vm0, %v2482_v46, %v1944_v47  ;;  %v879_v1 = vsel %vm236_vm0, %v2487_v56, %v1943_v11 }
 0x1bb   :  { %1189 = vmatmul.mubr.bf16.gmra.mrb[16].mxu1 %v937_v61  ;;  %v1947_v34 = vpop.permute.xlu1 %1946  ;;  %v911_v16 = vsel %vm569_vm2, %v903_v63, %v1953_v57  ;;  %v912_v62 = vsel %vm569_vm2, %v904_v51, %v1954_v25 }
 0x1bc   :  { %v1949_v36 = vunpack.i.h.bf16 %v1947_v34  ;;  %v1948_v6 = vunpack.i.l.bf16 %v1947_v34  ;;  %v1957_v30 = vpop.permute.xlu0 %1956 }
 0x1bd   :  { %v1959_v31 = vunpack.i.h.bf16 %v1957_v30  ;;  %v1958_v4 = vunpack.i.l.bf16 %v1957_v30 }
 0x1be   :  { %v887_v48 = vsel %vm569_vm2, %v879_v1, %v1948_v6  ;;  %v888_v24 = vsel %vm569_vm2, %v880_v10, %v1949_v36 }
 0x1bf   :  { %v1962_v22 = vpop.permute.xlu1 %1961  ;;  %v919_v29 = vsel %vm578_vm3, %v911_v16, %v1958_v4  ;;  %v920_v54 = vsel %vm578_vm3, %v912_v62, %v1959_v31  ;;  %v895_v46 = vsel %vm578_vm3, %v887_v48, %v1918_v33  ;;  %v896_v41 = vsel %vm578_vm3, %v888_v24, %v1919_v28 }
 0x1c0   :  { %v1972_v56 = vpop.permute.xlu0 %1971  ;;  %v941_v39 = vpack.c.bf16 %v920_v54, %v919_v29  ;;  %v940_v23 = vpack.c.bf16 %v896_v41, %v895_v46  ;;  %v1964_v37 = vunpack.i.h.bf16 %v1962_v22  ;;  %v1963_v44 = vunpack.i.l.bf16 %v1962_v22 }
 0x1c1   :  { %v1974_v34 = vunpack.i.h.bf16 %v1972_v56  ;;  %v1973_v28 = vunpack.i.l.bf16 %v1972_v56 }
 0x1c2   :  { %1196 = vmatprep.mubr.bf16.mxu1 %v941_v39  ;;  %v882_v43 = vsel %vm236_vm0, %v2507_v2, %v1964_v37  ;;  %v881_v40 = vsel %vm236_vm0, %v2484_v55, %v1963_v44 }
 0x1c3   :  { %1197 = vmatmul.mubr.bf16.gmra.mrb[20].mxu1 %v940_v23  ;;  %v1967_v32 = vpop.permute.xlu1 %1966  ;;  %v908_v48 = vsel %vm236_vm0, %v2557_v49, %v1974_v34  ;;  %v907_v24 = vsel %vm236_vm0, %v2546_v17, %v1973_v28 }
 0x1c4   :  { %v1977_v15 = vpop.permute.xlu0 %1976  ;;  %v1969_v45 = vunpack.i.h.bf16 %v1967_v32  ;;  %v1968_v52 = vunpack.i.l.bf16 %v1967_v32 }
 0x1c5   :  { %v1979_v60 = vunpack.i.h.bf16 %v1977_v15  ;;  %v1978_v53 = vunpack.i.l.bf16 %v1977_v15 }
 0x1c6   :  { %v889_v61 = vsel %vm569_vm2, %v881_v40, %v1968_v52  ;;  %v890_v58 = vsel %vm569_vm2, %v882_v43, %v1969_v45 }
 0x1c7   :  { %v1997_v50 = vpop.permute.xlu1 %1996  ;;  %v906_v47 = vsel %vm236_vm0, %v2544_v35, %v1979_v60  ;;  %v905_v11 = vsel %vm236_vm0, %v2515_v5, %v1978_v53  ;;  %v2843_v53 = vpack.c.bf16 %v2427_v19, %v2423_v18  ;;  %v2047_v19 = vld [vmem:[%s2840_s5 + $0x8] sm:$0xff]  }
 0x1c8   :  { %v1982_v42 = vpop.permute.xlu0 %1981  ;;  %v1999_v59 = vunpack.i.h.bf16 %v1997_v50  ;;  %v1998_v9 = vunpack.i.l.bf16 %v1997_v50 }
 0x1c9   :  { %v1984_v38 = vunpack.i.h.bf16 %v1982_v42  ;;  %v1983_v14 = vunpack.i.l.bf16 %v1982_v42 }
 0x1ca   :  { %v897_v55 = vsel %vm578_vm3, %v889_v61, %v1998_v9  ;;  %v898_v63 = vsel %vm578_vm3, %v890_v58, %v1999_v59  ;;  %v2844_v9 = vpack.c.bf16 %v2429_v20, %v2434_v21  ;;  %v2728_v21 = vld [vmem:[%s2839_s4] ss:$0 sm:$0xff] }
 0x1cb   :  { %v2002_v0 = vpop.permute.xlu1 %2001  ;;  %v913_v51 = vsel %vm569_vm2, %v905_v11, %v1983_v14  ;;  %v914_v2 = vsel %vm569_vm2, %v906_v47, %v1984_v38  ;;  %v943_v4 = vpack.c.bf16 %v898_v63, %v897_v55  ;;  %v684_v38 = vld [vmem:[#allocation2 + $0x132] sm:$0xff] }
 0x1cc   :  { %v1987_v3 = vpop.permute.xlu0 %1986  ;;  %v2004_v6 = vunpack.i.h.bf16 %v2002_v0  ;;  %v2003_v30 = vunpack.i.l.bf16 %v2002_v0  ;;  %v948_v7 = vpack.c.bf16 %v684_v38, %v2523_v13 }
 0x1cd   :  { %v1989_v25 = vunpack.i.h.bf16 %v1987_v3  ;;  %v1988_v57 = vunpack.i.l.bf16 %v1987_v3 }
 0x1ce   :  { %v884_v29 = vsel %vm236_vm0, %v2537_v27, %v2004_v6  ;;  %v883_v54 = vsel %vm236_vm0, %v2534_v26, %v2003_v30 }
 0x1cf   :  { %v2007_v33 = vpop.permute.xlu1 %2006  ;;  %v921_v36 = vsel %vm578_vm3, %v913_v51, %v1988_v57  ;;  %v922_v35 = vsel %vm578_vm3, %v914_v2, %v1989_v25 }
 0x1d0   :  { %v1992_v5 = vpop.permute.xlu0 %1991  ;;  %v944_v10 = vpack.c.bf16 %v922_v35, %v921_v36  ;;  %v2009_v1 = vunpack.i.h.bf16 %v2007_v33  ;;  %v2008_v31 = vunpack.i.l.bf16 %v2007_v33 }
 0x1d1   :  { %v1994_v16 = vunpack.i.h.bf16 %v1992_v5  ;;  %v1993_v62 = vunpack.i.l.bf16 %v1992_v5 }
 0x1d2   :  { %1204 = vmatprep.mubr.bf16.mxu1 %v944_v10  ;;  %v891_v39 = vsel %vm569_vm2, %v883_v54, %v2008_v31  ;;  %v892_v23 = vsel %vm569_vm2, %v884_v29, %v2009_v1 }
 0x1d3   :  { %1205 = vmatmul.mubr.bf16.gmra.mrb[24].mxu1 %v943_v4  ;;  %v2017_v22 = vpop.permute.xlu1 %2016  ;;  %v915_v15 = vsel %vm569_vm2, %v907_v24, %v1993_v62  ;;  %v916_v17 = vsel %vm569_vm2, %v908_v48, %v1994_v16 }
 0x1d4   :  { %v2019_v46 = vunpack.i.h.bf16 %v2017_v22  ;;  %v2018_v41 = vunpack.i.l.bf16 %v2017_v22  ;;  %v2012_v56 = vpop.permute.xlu0 %2011 }
 0x1d5   :  { %v2014_v32 = vunpack.i.h.bf16 %v2012_v56  ;;  %v2013_v49 = vunpack.i.l.bf16 %v2012_v56 }
 0x1d6   :  { %v899_v37 = vsel %vm578_vm3, %v891_v39, %v2018_v41  ;;  %v900_v27 = vsel %vm578_vm3, %v892_v23, %v2019_v46 }
 0x1d7   :  { %v923_v44 = vsel %vm578_vm3, %v915_v15, %v2013_v49  ;;  %v924_v26 = vsel %vm578_vm3, %v916_v17, %v2014_v32  ;;  %v946_v50 = vpack.c.bf16 %v900_v27, %v899_v37 }
 0x1d8   :  { %v947_v45 = vpack.c.bf16 %v924_v26, %v923_v44 }
 0x1da   :  { %1212 = vmatprep.mubr.bf16.mxu1 %v947_v45 }
 0x1db   :  { %1213 = vmatmul.mubr.bf16.gmra.mrb[28].mxu1 %v946_v50 }
 0x1dc   :  { %1741 = vmatprep.mubr.msk.bf16.mxu1 %vm236_vm0, %v939_v12  ;;  %v2046_v12 = vld [vmem:[%s2840_s5] sm:$0xff]   ;;  %s2092_s5 = smov [#allocation3]  }
 0x1dd   :  { %1749 = vmatprep.subr.bf16.mxu0 %v2046_v12  ;;  %s1539_s22 = sshll.u32 %s2092_s5, 4  ;;  %s1540_s22 = int_to_ptr.vmem [resolvable:$true] %s1539_s22 }
 0x1de   :  { %1750 = vmatpush3.bf16.msra.mxu0 %v2046_v12  ;;  %s2064_s25 = scalar_lea.vmem %s1540_s22, 2048  ;;  %p2069_p1 = scmp.lt.s32.totalorder %s1540_s22, %s1540_s22 }
 0x1df   :  { %1751 = vmatprep.subr.bf16.mxu0 %v2047_v19  ;;  %p2065_p0 = scmp.ne.s32.totalorder %s1540_s22, %s2064_s25  ;;  %p2070_p2 = scmp.lt.s32.totalorder %s2064_s25, %s2064_s25 }
 0x1e0   :  { %v1735_v52 = vpop.f32.mrb[16].mxu0 }
 0x1e1   :  { %v1255_v42 = vpop.f32.mrb[17].mxu0  ;;  %p2071_p3 = por %p2070_p2, %p2069_p1 }
 0x1e2   :  { %v1736_v60 = vpop.f32.mrb[18].mxu0  ;;  %1752 = vmatpush3.bf16.msra.mxu0 %v2047_v19 }
 0x1e3   :  { %1742 = vmatmul.mubr.msk.bf16.vlgmr.msra.gmra.mrb[32].mxu1 %vm236_vm0, %v2843_v53  ;;  %v1258_v59 = vpop.f32.mrb[19].mxu0  ;;  %p2072_p4 = pnand %p2071_p3, %p2065_p0 }
 0x1e4   :  { %1745 = vmatprep.mubr.msk.bf16.mxu1 %vm236_vm0, %v2844_v9 }
 0x1e8   :  { %v1739_v14 = vpop.f32.mrb[20].mxu0 }
 0x1e9   :  { %v1271_v43 = vpop.f32.mrb[21].mxu0 }
 0x1ea   :  { %v1740_v8 = vpop.f32.mrb[22].mxu0 }
 0x1eb   :  { %1746 = vmatmul.mubr.msk.bf16.gmra.mrb[36].mxu1 %vm236_vm0, %v948_v7  ;;  %v1274_v18 = vpop.f32.mrb[23].mxu0 }
 0x25e   :  { %v1629_v20 = vpop.f32.mrb[0].mxu1 }
 0x25f   :  { %v1630_v13 = vpop.f32.mrb[1].mxu1 }
 0x260   :  { %v1631_v40 = vadd.f32 %v1630_v13, %v1629_v20  ;;  %v1632_v0 = vpop.f32.mrb[2].mxu1 }
 0x261   :  { %v1633_v61 = vpop.f32.mrb[3].mxu1 }
 0x262   :  { %v1159_v58 = vadd.f32 %v1631_v40, %v2728_v21  ;;  %v1634_v3 = vadd.f32 %v1633_v61, %v1632_v0 }
 0x264   :  { %v1256_v47 = vadd.f32 %v1255_v42, %v1159_v58  ;;  %v1162_v11 = vadd.f32 %v1634_v3, %v2728_v21 }
 0x266   :  { %v1259_v25 = vadd.f32 %v1258_v59, %v1162_v11  ;;  %v1635_v57 = vpop.f32.mrb[4].mxu1  ;;  %v1318_v2 = vmax.f32 %v1256_v47, 0.0 }
 0x267   :  { %v1636_v51 = vpop.f32.mrb[5].mxu1 }
 0x268   :  { %v1319_v55 = vmax.f32 %v1259_v25, 0.0  ;;  %v1637_v63 = vadd.f32 %v1636_v51, %v1635_v57  ;;  %v1638_v34 = vpop.f32.mrb[6].mxu1 }
 0x269   :  { %v1639_v28 = vpop.f32.mrb[7].mxu1 }
 0x26a   :  { %v1334_v33 = vpack.c.bf16 %v1319_v55, %v1318_v2  ;;  %v1167_v36 = vadd.f32 %v1637_v63, %v2728_v21  ;;  %v1640_v35 = vadd.f32 %v1639_v28, %v1638_v34 }
 0x26c   :  { %v1264_v6 = vadd.f32 %v1735_v52, %v1167_v36  ;;  %v1170_v30 = vadd.f32 %v1640_v35, %v2728_v21  ;;  %1753 = vmatprep.mubr.msk.bf16.mxu0 %vm236_vm0, %v1334_v33 }
 0x26e   :  { %v1267_v5 = vadd.f32 %v1736_v60, %v1170_v30  ;;  %v1320_v10 = vmax.f32 %v1264_v6, 0.0 }
 0x270   :  { %v1321_v1 = vmax.f32 %v1267_v5, 0.0 }
 0x272   :  { %v1335_v31 = vpack.c.bf16 %v1321_v1, %v1320_v10 }
 0x274   :  { %1754 = vmatmul.mubr.msk.bf16.vlgmr.msra.gmra.mrb[24].mxu0 %vm236_vm0, %v1335_v31 }
 0x27e   :  { %v1641_v4 = vpop.f32.mrb[8].mxu1 }
 0x27f   :  { %v1642_v16 = vpop.f32.mrb[9].mxu1 }
 0x280   :  { %v1643_v62 = vadd.f32 %v1642_v16, %v1641_v4  ;;  %v1644_v48 = vpop.f32.mrb[10].mxu1 }
 0x281   :  { %v1645_v24 = vpop.f32.mrb[11].mxu1 }
 0x282   :  { %v1175_v22 = vadd.f32 %v1643_v62, %v2728_v21  ;;  %v1646_v29 = vadd.f32 %v1645_v24, %v1644_v48 }
 0x284   :  { %v1272_v54 = vadd.f32 %v1271_v43, %v1175_v22  ;;  %v1178_v46 = vadd.f32 %v1646_v29, %v2728_v21 }
 0x286   :  { %v1275_v41 = vadd.f32 %v1274_v18, %v1178_v46  ;;  %v1647_v56 = vpop.f32.mrb[12].mxu1  ;;  %v1322_v23 = vmax.f32 %v1272_v54, 0.0 }
 0x287   :  { %v1648_v39 = vpop.f32.mrb[13].mxu1 }
 0x288   :  { %v1323_v32 = vmax.f32 %v1275_v41, 0.0  ;;  %v1649_v49 = vadd.f32 %v1648_v39, %v1647_v56  ;;  %v1650_v15 = vpop.f32.mrb[14].mxu1 }
 0x289   :  { %v1651_v17 = vpop.f32.mrb[15].mxu1 }
 0x28a   :  { %v1336_v37 = vpack.c.bf16 %v1323_v32, %v1322_v23  ;;  %v1183_v27 = vadd.f32 %v1649_v49, %v2728_v21  ;;  %v1652_v44 = vadd.f32 %v1651_v17, %v1650_v15 }
 0x28c   :  { %v1280_v26 = vadd.f32 %v1739_v14, %v1183_v27  ;;  %v1186_v50 = vadd.f32 %v1652_v44, %v2728_v21  ;;  %1757 = vmatprep.mubr.msk.bf16.mxu0 %vm236_vm0, %v1336_v37 }
 0x28e   :  { %v1283_v45 = vadd.f32 %v1740_v8, %v1186_v50  ;;  %v1653_v52 = vpop.f32.mrb[16].mxu1  ;;  %v1324_v60 = vmax.f32 %v1280_v26, 0.0 }
 0x28f   :  { %v1654_v42 = vpop.f32.mrb[17].mxu1 }
 0x290   :  { %v1325_v53 = vmax.f32 %v1283_v45, 0.0  ;;  %v1655_v59 = vadd.f32 %v1654_v42, %v1653_v52  ;;  %v1656_v9 = vpop.f32.mrb[18].mxu1  ;;  %v2757_v52 = vld [vmem:[%s2841_s6] ss:$0 sm:$0xff] }
 0x291   :  { %v1657_v38 = vpop.f32.mrb[19].mxu1 }
 0x292   :  { %v1337_v43 = vpack.c.bf16 %v1325_v53, %v1324_v60  ;;  %v1658_v7 = vadd.f32 %v1657_v38, %v1656_v9  ;;  %v1191_v34 = vadd.f32 %v1655_v59, %v2728_v21  ;;  %v2048_v9 = vld [vmem:[%s2835_s0 + $0x10] sm:$0xff] }
 0x294   :  { %1758 = vmatmul.mubr.msk.bf16.gmra.mrb[28].mxu0 %vm236_vm0, %v1337_v43  ;;  %v1194_v30 = vadd.f32 %v1658_v7, %v2728_v21 }
 0x296   :  { %v1659_v12 = vpop.f32.mrb[20].mxu1 }
 0x297   :  { %v1660_v18 = vpop.f32.mrb[21].mxu1 }
 0x298   :  { %v1661_v19 = vadd.f32 %v1660_v18, %v1659_v12  ;;  %v1662_v14 = vpop.f32.mrb[22].mxu1  ;;  %v2049_v12 = vld [vmem:[%s2835_s0] sm:$0xff] }
 0x299   :  { %v1663_v20 = vpop.f32.mrb[23].mxu1 }
 0x29a   :  { %v1664_v13 = vadd.f32 %v1663_v20, %v1662_v14  ;;  %v1199_v55 = vadd.f32 %v1661_v19, %v2728_v21  ;;  %v2050_v20 = vld [vmem:[%s2835_s0 + $0x18] sm:$0xff] }
 0x29c   :  { %v1202_v36 = vadd.f32 %v1664_v13, %v2728_v21 }
 0x2a6   :  { %v1665_v40 = vpop.f32.mrb[24].mxu1 }
 0x2a7   :  { %v1666_v0 = vpop.f32.mrb[25].mxu1 }
 0x2a8   :  { %v1667_v8 = vadd.f32 %v1666_v0, %v1665_v40  ;;  %v1668_v61 = vpop.f32.mrb[26].mxu1  ;;  %v2051_v0 = vld [vmem:[%s2835_s0 + $0x8] sm:$0xff] }
 0x2a9   :  { %v1669_v58 = vpop.f32.mrb[27].mxu1 }
 0x2aa   :  { %v1670_v3 = vadd.f32 %v1669_v58, %v1668_v61  ;;  %v1207_v54 = vadd.f32 %v1667_v8, %v2728_v21 }
 0x2ac   :  { %v1210_v32 = vadd.f32 %v1670_v3, %v2728_v21 }
 0x2ae   :  { %v1671_v47 = vpop.f32.mrb[28].mxu1 }
 0x2af   :  { %v1672_v11 = vpop.f32.mrb[29].mxu1 }
 0x2b0   :  { %v1673_v25 = vadd.f32 %v1672_v11, %v1671_v47  ;;  %v1674_v57 = vpop.f32.mrb[30].mxu1 }
 0x2b1   :  { %v1675_v51 = vpop.f32.mrb[31].mxu1 }
 0x2b2   :  { %v1676_v2 = vadd.f32 %v1675_v51, %v1674_v57  ;;  %v1215_v24 = vadd.f32 %v1673_v25, %v2728_v21  ;;  %v2052_v51 = vld [vmem:[%s2835_s0 + $0x30] sm:$0xff] }
 0x2b4   :  { %v1218_v56 = vadd.f32 %v1676_v2, %v2728_v21 }
 0x2b6   :  { %v1743_v63 = vpop.f32.mrb[32].mxu1 }
 0x2b7   :  { %v1296_v28 = vadd.f32 %v1743_v63, %v1199_v55  ;;  %v1287_v33 = vpop.f32.mrb[33].mxu1 }
 0x2b8   :  { %v1288_v35 = vadd.f32 %v1287_v33, %v1191_v34  ;;  %v1744_v6 = vpop.f32.mrb[34].mxu1  ;;  %v2053_v34 = vld [vmem:[%s2835_s0 + $0x20] sm:$0xff] }
 0x2b9   :  { %v1299_v5 = vadd.f32 %v1744_v6, %v1202_v36  ;;  %v1290_v10 = vpop.f32.mrb[35].mxu1  ;;  %v1328_v31 = vmax.f32 %v1296_v28, 0.0 }
 0x2ba   :  { %v1291_v1 = vadd.f32 %v1290_v10, %v1194_v30  ;;  %v1326_v16 = vmax.f32 %v1288_v35, 0.0  ;;  %v2054_v35 = vld [vmem:[%s2835_s0 + $0x38] sm:$0xff] }
 0x2bb   :  { %v1329_v4 = vmax.f32 %v1299_v5, 0.0  ;;  %v2055_v5 = vld [vmem:[%s2835_s0 + $0x28] sm:$0xff] }
 0x2bc   :  { %v1327_v62 = vmax.f32 %v1291_v1, 0.0 }
 0x2bd   :  { %v1339_v48 = vpack.c.bf16 %v1329_v4, %v1328_v31 }
 0x2be   :  { %v1338_v22 = vpack.c.bf16 %v1327_v62, %v1326_v16  ;;  %v1747_v29 = vpop.f32.mrb[36].mxu1 }
 0x2bf   :  { %v1312_v46 = vadd.f32 %v1747_v29, %v1215_v24  ;;  %v1303_v41 = vpop.f32.mrb[37].mxu1 }
 0x2c0   :  { %v1304_v39 = vadd.f32 %v1303_v41, %v1207_v54  ;;  %v1748_v23 = vpop.f32.mrb[38].mxu1  ;;  %1761 = vmatprep.mubr.msk.bf16.mxu0 %vm236_vm0, %v1338_v22  ;;  %v2056_v22 = vld [vmem:[%s2835_s0 + $0x50] sm:$0xff]  ;;  %v2057_v41 = vld [vmem:[%s2835_s0 + $0x40] sm:$0xff] }
 0x2c1   :  { %v1315_v49 = vadd.f32 %v1748_v23, %v1218_v56  ;;  %v1306_v15 = vpop.f32.mrb[39].mxu1  ;;  %1762 = vmatmul.mubr.msk.bf16.gmra.mrb[32].mxu0 %vm236_vm0, %v1339_v48  ;;  %v1332_v37 = vmax.f32 %v1312_v46, 0.0 }
 0x2c2   :  { %v1307_v17 = vadd.f32 %v1306_v15, %v1210_v32  ;;  %v1330_v44 = vmax.f32 %v1304_v39, 0.0  ;;  %v2058_v32 = vld [vmem:[%s2835_s0 + $0x58] sm:$0xff] }
 0x2c3   :  { %v1333_v27 = vmax.f32 %v1315_v49, 0.0 }
 0x2c4   :  { %v1331_v26 = vmax.f32 %v1307_v17, 0.0  ;;  %v2059_v17 = vld [vmem:[%s2835_s0 + $0x48] sm:$0xff] }
 0x2c5   :  { %v1341_v50 = vpack.c.bf16 %v1333_v27, %v1332_v37 }
 0x2c6   :  { %v1340_v45 = vpack.c.bf16 %v1331_v26, %v1330_v44 }
 0x2c8   :  { %1765 = vmatprep.mubr.msk.bf16.mxu0 %vm236_vm0, %v1340_v45 }
 0x2c9   :  { %1766 = vmatmul.mubr.msk.bf16.gmra.mrb[36].mxu0 %vm236_vm0, %v1341_v50 }
 0x347   :  { %v1755_v21 = vpop.f32.mrb[24].mxu0 }
 0x348   :  { %v1432_v42 = vadd.f32 %v1755_v21, %v2757_v52  ;;  %v1423_v60 = vpop.f32.mrb[25].mxu0 }
 0x349   :  { %v1424_v53 = vadd.f32 %v2757_v52, %v1423_v60  ;;  %v1756_v59 = vpop.f32.mrb[26].mxu0  ;;  %v2060_v60 = vld [vmem:[%s2835_s0 + $0x70] sm:$0xff] }
 0x34a   :  { %v1488_v38 = vadd.f32 %v2048_v9, %v1432_v42  ;;  %v1435_v43 = vadd.f32 %v1756_v59, %v2757_v52  ;;  %v1426_v7 = vpop.f32.mrb[27].mxu0 }
 0x34b   :  { %v1486_v18 = vadd.f32 %v2049_v12, %v1424_v53  ;;  %v1427_v19 = vadd.f32 %v2757_v52, %v1426_v7 }
 0x34c   :  { %v1504_v14 = vmax.f32 %v1488_v38, 0.0  ;;  %v1489_v13 = vadd.f32 %v2050_v20, %v1435_v43  ;;  %v2061_v38 = vld [vmem:[%s2835_s0 + $0x60] sm:$0xff]  ;;  %v2063_v20 = vld [vmem:[%s2835_s0 + $0x68] sm:$0xff] }
 0x34d   :  { %v1502_v40 = vmax.f32 %v1486_v18, 0.0  ;;  %v1487_v8 = vadd.f32 %v2051_v0, %v1427_v19  ;;  %v2062_v18 = vld [vmem:[%s2835_s0 + $0x78] sm:$0xff] }
 0x34e   :  { %1520 = vst [vmem:[#allocation3 + $0x10] sm:$0xff] %v1504_v14  ;;  %v1505_v61 = vmax.f32 %v1489_v13, 0.0 }
 0x34f   :  { %1518 = vst [vmem:[#allocation3] sm:$0xff] %v1502_v40  ;;  %v1503_v58 = vmax.f32 %v1487_v8, 0.0 }
 0x350   :  { %1521 = vst [vmem:[#allocation3 + $0x18] sm:$0xff] %v1505_v61 }
 0x351   :  { %1519 = vst [vmem:[#allocation3 + $0x8] sm:$0xff] %v1503_v58 }
 0x367   :  { %v1759_v3 = vpop.f32.mrb[28].mxu0 }
 0x368   :  { %v1448_v47 = vadd.f32 %v1759_v3, %v2757_v52  ;;  %v1439_v11 = vpop.f32.mrb[29].mxu0 }
 0x369   :  { %v1440_v25 = vadd.f32 %v2757_v52, %v1439_v11  ;;  %v1760_v57 = vpop.f32.mrb[30].mxu0 }
 0x36a   :  { %v1492_v2 = vadd.f32 %v2052_v51, %v1448_v47  ;;  %v1451_v55 = vadd.f32 %v1760_v57, %v2757_v52  ;;  %v1442_v63 = vpop.f32.mrb[31].mxu0 }
 0x36b   :  { %v1490_v28 = vadd.f32 %v2053_v34, %v1440_v25  ;;  %v1443_v33 = vadd.f32 %v2757_v52, %v1442_v63 }
 0x36c   :  { %v1508_v36 = vmax.f32 %v1492_v2, 0.0  ;;  %v1493_v6 = vadd.f32 %v2054_v35, %v1451_v55 }
 0x36d   :  { %v1506_v30 = vmax.f32 %v1490_v28, 0.0  ;;  %v1491_v10 = vadd.f32 %v2055_v5, %v1443_v33 }
 0x36e   :  { %1524 = vst [vmem:[#allocation3 + $0x30] sm:$0xff] %v1508_v36  ;;  %v1509_v1 = vmax.f32 %v1493_v6, 0.0 }
 0x36f   :  { %1522 = vst [vmem:[#allocation3 + $0x20] sm:$0xff] %v1506_v30  ;;  %v1507_v31 = vmax.f32 %v1491_v10, 0.0 }
 0x370   :  { %1525 = vst [vmem:[#allocation3 + $0x38] sm:$0xff] %v1509_v1 }
 0x371   :  { %1523 = vst [vmem:[#allocation3 + $0x28] sm:$0xff] %v1507_v31 }
 0x394   :  { %v1763_v4 = vpop.f32.mrb[32].mxu0 }
 0x395   :  { %v1464_v16 = vadd.f32 %v1763_v4, %v2757_v52  ;;  %v1455_v62 = vpop.f32.mrb[33].mxu0 }
 0x396   :  { %v1456_v48 = vadd.f32 %v2757_v52, %v1455_v62  ;;  %v1764_v24 = vpop.f32.mrb[34].mxu0 }
 0x397   :  { %v1496_v29 = vadd.f32 %v2056_v22, %v1464_v16  ;;  %v1467_v54 = vadd.f32 %v1764_v24, %v2757_v52  ;;  %v1458_v46 = vpop.f32.mrb[35].mxu0 }
 0x398   :  { %v1494_v56 = vadd.f32 %v2057_v41, %v1456_v48  ;;  %v1459_v39 = vadd.f32 %v2757_v52, %v1458_v46 }
 0x399   :  { %v1512_v23 = vmax.f32 %v1496_v29, 0.0  ;;  %v1497_v49 = vadd.f32 %v2058_v32, %v1467_v54 }
 0x39a   :  { %v1510_v15 = vmax.f32 %v1494_v56, 0.0  ;;  %v1495_v37 = vadd.f32 %v2059_v17, %v1459_v39 }
 0x39b   :  { %1528 = vst [vmem:[#allocation3 + $0x50] sm:$0xff] %v1512_v23  ;;  %v1513_v27 = vmax.f32 %v1497_v49, 0.0 }
 0x39c   :  { %1526 = vst [vmem:[#allocation3 + $0x40] sm:$0xff] %v1510_v15  ;;  %v1511_v44 = vmax.f32 %v1495_v37, 0.0  ;;  %v1767_v26 = vpop.f32.mrb[36].mxu0 }
 0x39d   :  { %1529 = vst [vmem:[#allocation3 + $0x58] sm:$0xff] %v1513_v27  ;;  %v1480_v50 = vadd.f32 %v1767_v26, %v2757_v52  ;;  %v1471_v45 = vpop.f32.mrb[37].mxu0 }
 0x39e   :  { %1527 = vst [vmem:[#allocation3 + $0x48] sm:$0xff] %v1511_v44  ;;  %v1472_v21 = vadd.f32 %v2757_v52, %v1471_v45  ;;  %v1768_v42 = vpop.f32.mrb[38].mxu0 }
 0x39f   :  { %v1500_v53 = vadd.f32 %v2060_v60, %v1480_v50  ;;  %v1483_v59 = vadd.f32 %v1768_v42, %v2757_v52  ;;  %v1474_v9 = vpop.f32.mrb[39].mxu0 }
 0x3a0   :  { %v1498_v43 = vadd.f32 %v2061_v38, %v1472_v21  ;;  %v1475_v7 = vadd.f32 %v2757_v52, %v1474_v9 }
 0x3a1   :  { %v1516_v12 = vmax.f32 %v1500_v53, 0.0  ;;  %v1501_v19 = vadd.f32 %v2062_v18, %v1483_v59 }
 0x3a2   :  { %v1514_v14 = vmax.f32 %v1498_v43, 0.0  ;;  %v1499_v13 = vadd.f32 %v2063_v20, %v1475_v7 }
 0x3a3   :  { %1532 = vst [vmem:[#allocation3 + $0x70] sm:$0xff] %v1516_v12  ;;  %v1517_v40 = vmax.f32 %v1501_v19, 0.0 }
 0x3a4   :  { %1530 = vst [vmem:[#allocation3 + $0x60] sm:$0xff] %v1514_v14  ;;  %v1515_v0 = vmax.f32 %v1499_v13, 0.0 }
 0x3a5   :  { %1533 = vst [vmem:[#allocation3 + $0x78] sm:$0xff] %v1517_v40 }
 0x3a6   :  { %1531 = vst [vmem:[#allocation3 + $0x68] sm:$0xff] %v1515_v0 }
 0x3a7   :  { %2075 = shalt.err (!%p2072_p4)
}
 0x3a8   :  { %s2076_s28 = scalar_lea.hbm %s2842_s7, 2048 }
 0x3a9   :  { %p2077_p5 = scmp.ne.s32.totalorder %s2842_s7, %s2076_s28  ;;  %p2080_p6 = scmp.lt.u32.totalorder %s2076_s28, %s2842_s7 }
 0x3ab   :  { %p2082_p7 = pnand %p2080_p6, %p2077_p5 }
 0x3ad   :  { %2085 = shalt.err (!%p2082_p7)
}
 0x3ae   :  { %s2093_s8 = smov 128   ;;  %s2094_s9 = smov 8  }
 0x3af   :  { %1545 = dma.vmem_to_hbm [thread:$0]  %s1540_s22, 2048, %s2842_s7, [#allocation4], %s2093_s8, %s2093_s8, %s2094_s9  }
 0x3b0   :  { %2086 = dma.done.wait [#allocation4], 2048  }
 0x3b1   :  { %2087 = vsyncadd [#allocation4], 4294965248 }
 0x3b2   :  { %1549 = vsyncpa [#allocation4], 1 }

</bundles_post_ra>
